<compile_context>
chip_gen: v7x
topology: tpu7x:2x2x1
jax: 0.10.0
libtpu: 0.0.40
codegen_flags: <defaults>
</compile_context>

<pallas_src>
import jax
import jax.numpy as jnp
from jax import lax
from jax.experimental import pallas as pl
from jax.experimental.pallas import tpu as pltpu

# Model dims (from the module definition).
FEAT = 16 * 4 * 4 * 4          # 1024 — classifier input dim
H1, H2 = 120, 84
N_CLASSES = 11                 # default N=11
PAD = 128                      # lane-dense padded width for 120 / 84 / 11
NUM_BOXES = 4                  # synthetic number of detector box proposals per image
IMG_C, IMG_H, IMG_W = 3, 16, 16
IMG_FEAT = IMG_C * IMG_H * IMG_W   # 768 — already a multiple of 128

NEG_INF = -1e30


# --------------------------------------------------------------------------
# Fused Pallas kernel (one image per grid step):
#   features = tanh(x @ net_w[number])          (selected-box slab only)
#   h1 = relu(features @ W1 + b1)
#   h2 = relu(h1 @ W2 + b2)
#   probs = softmax(h2 @ W3 + b3)               (padded lanes masked out)
# --------------------------------------------------------------------------
def fused_classifier_kernel(num_ref, x_ref, nw_ref,
                            w1_ref, b1_ref, w2_ref, b2_ref, w3_ref, b3_ref,
                            o_ref):
    del num_ref  # only consumed by the index_maps (selects the net_w slab)

    x = x_ref[...]                                          # (1, IMG_FEAT) f32

    # Synthetic per-box feature extractor (stand-in for self.net's box_features).
    f = jnp.dot(x.astype(jnp.bfloat16), nw_ref[...],
                preferred_element_type=jnp.float32)          # (1, FEAT) f32
    f = jnp.tanh(f)

    h = jnp.dot(f.astype(jnp.bfloat16), w1_ref[...],
                preferred_element_type=jnp.float32) + b1_ref[...]
    h = jnp.maximum(h, 0.0)                                  # ReLU (f32)
    h = jnp.dot(h.astype(jnp.bfloat16), w2_ref[...],
                preferred_element_type=jnp.float32) + b2_ref[...]
    h = jnp.maximum(h, 0.0)                                  # ReLU (f32)
    logits = jnp.dot(h.astype(jnp.bfloat16), w3_ref[...],
                     preferred_element_type=jnp.float32) + b3_ref[...]  # (1, PAD)

    # Mask padded class lanes so they contribute 0 to the softmax.
    lane = lax.broadcasted_iota(jnp.int32, logits.shape, 1)
    logits = jnp.where(lane < N_CLASSES, logits, NEG_INF)

    # Numerically stable softmax over the class axis, divide on the EUP.
    m = jnp.max(logits, axis=-1, keepdims=True)
    e = jnp.exp(logits - m)
    denom = jnp.sum(e, axis=-1, keepdims=True)
    o_ref[...] = e * pl.reciprocal(denom, approx=True)       # (1, PAD) f32, lane-dense


def fused_classifier_pallas(number, img_flat, net_w, clf_params):
    """number: [B] int32; img_flat: [B, 1, IMG_FEAT] f32;
       net_w: [NUM_BOXES, IMG_FEAT, FEAT] bf16  ->  [B, PAD] f32 softmax probs."""
    w1p, b1p, w2p, b2p, w3p, b3p = clf_params
    B = img_flat.shape[0]

    def resident(shape):
        # Full-array block with a constant block index: stays resident in VMEM
        # across the batch grid (no re-DMA per step).
        return pl.BlockSpec(shape, lambda i, num: (0, 0))

    grid_spec = pltpu.PrefetchScalarGridSpec(
        num_scalar_prefetch=1,          # `number` lands in SMEM before the grid runs
        grid=(B,),
        in_specs=[
            # One image row per step (batch dim squeezed out of the kernel Ref).
            pl.BlockSpec((None, 1, IMG_FEAT), lambda i, num: (i, 0, 0)),
            # Only the selected box's weight slab is DMA'd for this image.
            pl.BlockSpec((None, IMG_FEAT, FEAT), lambda i, num: (num[i], 0, 0)),
            resident(w1p.shape), resident(b1p.shape),
            resident(w2p.shape), resident(b2p.shape),
            resident(w3p.shape), resident(b3p.shape),
        ],
        out_specs=pl.BlockSpec((None, 1, PAD), lambda i, num: (i, 0, 0)),
    )

    out = pl.pallas_call(
        fused_classifier_kernel,
        out_shape=jax.ShapeDtypeStruct((B, 1, PAD), jnp.float32),
        grid_spec=grid_spec,
        compiler_params=pltpu.CompilerParams(
            # Independent batch steps -> both TensorCores on v7x; harmless on v5e/v6e.
            dimension_semantics=("parallel",),
            # Slab double-buffer (2 x 1.5 MB bf16) + resident weights << 32 MiB.
            vmem_limit_bytes=32 * 1024 * 1024,
        ),
    )(number, img_flat, net_w, w1p, b1p, w2p, b2p, w3p, b3p)
    return out.reshape(B, PAD)


# --------------------------------------------------------------------------
# Deterministic parameter init (PyTorch nn.Linear-style uniform init),
# zero-padded to lane-dense 128 widths; weights stored in bf16, biases in f32.
# --------------------------------------------------------------------------
def init_linear(key, fan_in, fan_out, pad_in, pad_out):
    kw, kb = jax.random.split(key)
    bound = 1.0 / jnp.sqrt(jnp.float32(fan_in))
    w = jax.random.uniform(kw, (fan_in, fan_out), jnp.float32, -bound, bound)
    b = jax.random.uniform(kb, (1, fan_out), jnp.float32, -bound, bound)
    wp = jnp.zeros((pad_in, pad_out), jnp.float32).at[:fan_in, :fan_out].set(w)
    bp = jnp.zeros((1, pad_out), jnp.float32).at[:, :fan_out].set(b)
    return wp.astype(jnp.bfloat16), bp


def init_params(key):
    k1, k2, k3, k4 = jax.random.split(key, 4)
    w1p, b1p = init_linear(k1, FEAT, H1, FEAT, PAD)
    w2p, b2p = init_linear(k2, H1, H2, PAD, PAD)
    w3p, b3p = init_linear(k3, H2, N_CLASSES, PAD, PAD)
    clf_params = (w1p, b1p, w2p, b2p, w3p, b3p)
    # TODO(synk): self.net is an external detection backbone (returns per-image
    # 'box_features' dicts) with no clean Pallas translation; it is replaced by a
    # deterministic synthetic per-box linear+tanh feature extractor (one
    # [IMG_FEAT, FEAT] weight slab per box proposal).
    net_w = (jax.random.normal(k4, (NUM_BOXES, IMG_FEAT, FEAT), jnp.float32)
             * 0.02).astype(jnp.bfloat16)
    return net_w, clf_params


# --------------------------------------------------------------------------
# Full forward pass: only channel unpacking / final slice stay in plain JAX,
# feature extraction + MLP + softmax all run inside the Pallas kernel.
# --------------------------------------------------------------------------
def mnist_classifier_forward(inp, net_w, clf_params):
    # inp: [B, 2, C, H, W]; channel 0 = image, channel 1 carries the box index.
    img = inp[:, 0]                                        # [B, C, H, W]
    number = inp[:, 1][:, 0, 0, 0].astype(jnp.int32)       # [B]
    number = jnp.clip(number, 0, NUM_BOXES - 1)            # guard data-dependent DMA index
    B = img.shape[0]
    img_flat = img.reshape(B, 1, -1).astype(jnp.float32)   # [B, 1, IMG_FEAT]

    probs = fused_classifier_pallas(number, img_flat, net_w, clf_params)  # [B, PAD]
    out = probs[:, :N_CLASSES]                             # drop padded class lanes

    # x.squeeze(0): only drops dim 0 if it is size 1 (static shape check).
    if out.shape[0] == 1:
        out = out[0]
    return out


if __name__ == "__main__":
    key = jax.random.PRNGKey(0)
    k_params, k_img = jax.random.split(key)

    net_w, clf_params = init_params(k_params)

    # Example input: batch=2, 2 "channels" (image / number), C=3, H=W=16.
    B = 2
    img = jax.random.normal(k_img, (B, IMG_C, IMG_H, IMG_W), jnp.float32)
    numbers = jnp.array([1, 3], dtype=jnp.float32)         # valid box indices
    number_plane = jnp.broadcast_to(numbers[:, None, None, None],
                                    (B, IMG_C, IMG_H, IMG_W))
    inp = jnp.stack([img, number_plane], axis=1)           # [2, 2, 3, 16, 16]

    out = mnist_classifier_forward(inp, net_w, clf_params)
    out = jax.block_until_ready(out)

    assert out.shape == (B, N_CLASSES)
    assert bool(jnp.all(jnp.isfinite(out)))
    # softmax rows sum to ~1 (bf16 matmuls + approx reciprocal -> loose tolerance)
    assert bool(jnp.allclose(jnp.sum(out, axis=-1), 1.0, atol=1e-2))

    print("KERNEL_OK")
</pallas_src>

<mosaic_0001>
module attributes {stable_mosaic.version = 11 : i64} {
  func.func @fused_classifier_kernel(%arg0: i32, %arg1: memref<2xi32, #tpu.memory_space<smem>>, %arg2: memref<1x1x768xf32, #tpu.memory_space<vmem>>, %arg3: memref<1x768x1024xbf16, #tpu.memory_space<vmem>>, %arg4: memref<1024x128xbf16, #tpu.memory_space<vmem>>, %arg5: memref<1x128xf32, #tpu.memory_space<vmem>>, %arg6: memref<128x128xbf16, #tpu.memory_space<vmem>>, %arg7: memref<1x128xf32, #tpu.memory_space<vmem>>, %arg8: memref<128x128xbf16, #tpu.memory_space<vmem>>, %arg9: memref<1x128xf32, #tpu.memory_space<vmem>>, %arg10: memref<1x1x128xf32, #tpu.memory_space<vmem>>) attributes {dimension_semantics = [#tpu.dimension_semantics<parallel>], iteration_bounds = array<i64: 2>, scalar_prefetch = 1 : i64, scratch_operands = 0 : i64, tpu.core_type = #tpu.core_type<tc>, window_params = [{transform_indices = @transform_0, window_bounds = array<i64: 1, 1, 768>}, {transform_indices = @transform_1, window_bounds = array<i64: 1, 768, 1024>}, {pipeline_mode = #tpu.pipeline_mode<synchronous>, transform_indices = @transform_2, window_bounds = array<i64: 1024, 128>}, {pipeline_mode = #tpu.pipeline_mode<synchronous>, transform_indices = @transform_3, window_bounds = array<i64: 1, 128>}, {pipeline_mode = #tpu.pipeline_mode<synchronous>, transform_indices = @transform_4, window_bounds = array<i64: 128, 128>}, {pipeline_mode = #tpu.pipeline_mode<synchronous>, transform_indices = @transform_5, window_bounds = array<i64: 1, 128>}, {pipeline_mode = #tpu.pipeline_mode<synchronous>, transform_indices = @transform_6, window_bounds = array<i64: 128, 128>}, {pipeline_mode = #tpu.pipeline_mode<synchronous>, transform_indices = @transform_7, window_bounds = array<i64: 1, 128>}, {transform_indices = @transform_8, window_bounds = array<i64: 1, 1, 128>}]} {
    %c0 = arith.constant 0 : index
    %c0_0 = arith.constant 0 : index
    %c0_1 = arith.constant 0 : index
    %0 = vector.load %arg2[%c0, %c0_0, %c0_1] : memref<1x1x768xf32, #tpu.memory_space<vmem>>, vector<1x1x768xf32>
    %1 = vector.shape_cast %0 : vector<1x1x768xf32> to vector<1x768xf32>
    %2 = arith.truncf %1 : vector<1x768xf32> to vector<1x768xbf16>
    %c0_2 = arith.constant 0 : index
    %c0_3 = arith.constant 0 : index
    %c0_4 = arith.constant 0 : index
    %3 = vector.load %arg3[%c0_2, %c0_3, %c0_4] : memref<1x768x1024xbf16, #tpu.memory_space<vmem>>, vector<1x768x1024xbf16>
    %4 = vector.shape_cast %3 : vector<1x768x1024xbf16> to vector<768x1024xbf16>
    %cst = arith.constant dense<0.000000e+00> : vector<1x1024xf32>
    %5 = tpu.matmul %2, %4, %cst {dimension_numbers = #tpu.dot_dimension_numbers<[1], [0], [0], [1], [0, 0, 1, 1], [], []>} : vector<1x768xbf16>, vector<768x1024xbf16>, vector<1x1024xf32> -> vector<1x1024xf32>
    %6 = math.tanh %5 : vector<1x1024xf32>
    %7 = arith.truncf %6 : vector<1x1024xf32> to vector<1x1024xbf16>
    %c0_5 = arith.constant 0 : index
    %c0_6 = arith.constant 0 : index
    %8 = vector.load %arg4[%c0_5, %c0_6] : memref<1024x128xbf16, #tpu.memory_space<vmem>>, vector<1024x128xbf16>
    %cst_7 = arith.constant dense<0.000000e+00> : vector<1x128xf32>
    %9 = tpu.matmul %7, %8, %cst_7 {dimension_numbers = #tpu.dot_dimension_numbers<[1], [0], [0], [1], [0, 0, 1, 1], [], []>} : vector<1x1024xbf16>, vector<1024x128xbf16>, vector<1x128xf32> -> vector<1x128xf32>
    %c0_8 = arith.constant 0 : index
    %c0_9 = arith.constant 0 : index
    %10 = vector.load %arg5[%c0_8, %c0_9] : memref<1x128xf32, #tpu.memory_space<vmem>>, vector<1x128xf32>
    %11 = arith.addf %9, %10 : vector<1x128xf32>
    %cst_10 = arith.constant 0.000000e+00 : f32
    %12 = vector.broadcast %cst_10 : f32 to vector<1x128xf32>
    %13 = arith.maximumf %11, %12 : vector<1x128xf32>
    %14 = arith.truncf %13 : vector<1x128xf32> to vector<1x128xbf16>
    %c0_11 = arith.constant 0 : index
    %c0_12 = arith.constant 0 : index
    %15 = vector.load %arg6[%c0_11, %c0_12] : memref<128x128xbf16, #tpu.memory_space<vmem>>, vector<128x128xbf16>
    %cst_13 = arith.constant dense<0.000000e+00> : vector<1x128xf32>
    %16 = tpu.matmul %14, %15, %cst_13 {dimension_numbers = #tpu.dot_dimension_numbers<[1], [0], [0], [1], [0, 0, 1, 1], [], []>} : vector<1x128xbf16>, vector<128x128xbf16>, vector<1x128xf32> -> vector<1x128xf32>
    %c0_14 = arith.constant 0 : index
    %c0_15 = arith.constant 0 : index
    %17 = vector.load %arg7[%c0_14, %c0_15] : memref<1x128xf32, #tpu.memory_space<vmem>>, vector<1x128xf32>
    %18 = arith.addf %16, %17 : vector<1x128xf32>
    %cst_16 = arith.constant 0.000000e+00 : f32
    %19 = vector.broadcast %cst_16 : f32 to vector<1x128xf32>
    %20 = arith.maximumf %18, %19 : vector<1x128xf32>
    %21 = arith.truncf %20 : vector<1x128xf32> to vector<1x128xbf16>
    %c0_17 = arith.constant 0 : index
    %c0_18 = arith.constant 0 : index
    %22 = vector.load %arg8[%c0_17, %c0_18] : memref<128x128xbf16, #tpu.memory_space<vmem>>, vector<128x128xbf16>
    %cst_19 = arith.constant dense<0.000000e+00> : vector<1x128xf32>
    %23 = tpu.matmul %21, %22, %cst_19 {dimension_numbers = #tpu.dot_dimension_numbers<[1], [0], [0], [1], [0, 0, 1, 1], [], []>} : vector<1x128xbf16>, vector<128x128xbf16>, vector<1x128xf32> -> vector<1x128xf32>
    %c0_20 = arith.constant 0 : index
    %c0_21 = arith.constant 0 : index
    %24 = vector.load %arg9[%c0_20, %c0_21] : memref<1x128xf32, #tpu.memory_space<vmem>>, vector<1x128xf32>
    %25 = arith.addf %23, %24 : vector<1x128xf32>
    %26 = tpu.iota {dimensions = array<i32: 1>} : vector<1x128xi32>
    %c11_i32 = arith.constant 11 : i32
    %27 = vector.broadcast %c11_i32 : i32 to vector<1x128xi32>
    %28 = arith.cmpi slt, %26, %27 : vector<1x128xi32>
    %cst_22 = arith.constant -1.000000e+30 : f32
    %29 = vector.broadcast %cst_22 : f32 to vector<1x128xf32>
    %30 = arith.select %28, %25, %29 : vector<1x128xi1>, vector<1x128xf32>
    %cst_23 = arith.constant dense<0xFF800000> : vector<1xf32>
    %31 = vector.multi_reduction <maximumf>, %30, %cst_23 [1] : vector<1x128xf32> to vector<1xf32>
    %32 = vector.shape_cast %31 : vector<1xf32> to vector<1x1xf32>
    %33 = vector.broadcast %32 : vector<1x1xf32> to vector<1x128xf32>
    %34 = arith.subf %30, %33 : vector<1x128xf32>
    %35 = math.exp %34 : vector<1x128xf32>
    %cst_24 = arith.constant dense<0.000000e+00> : vector<1xf32>
    %36 = vector.multi_reduction <add>, %35, %cst_24 [1] : vector<1x128xf32> to vector<1xf32>
    %37 = vector.shape_cast %36 : vector<1xf32> to vector<1x1xf32>
    %38 = tpu.reciprocal %37 {approx = true} : vector<1x1xf32> -> vector<1x1xf32>
    %39 = vector.broadcast %38 : vector<1x1xf32> to vector<1x128xf32>
    %40 = arith.mulf %35, %39 : vector<1x128xf32>
    %c0_25 = arith.constant 0 : index
    %c0_26 = arith.constant 0 : index
    %c0_27 = arith.constant 0 : index
    %41 = vector.load %arg10[%c0_25, %c0_26, %c0_27] : memref<1x1x128xf32, #tpu.memory_space<vmem>>, vector<1x1x128xf32>
    %42 = vector.shape_cast %41 : vector<1x1x128xf32> to vector<1x128xf32>
    %43 = vector.shape_cast %40 : vector<1x128xf32> to vector<1x1x128xf32>
    tpu.vector_store %arg10[%c0_25, %c0_26, %c0_27], %43 {strides = array<i32>} : memref<1x1x128xf32, #tpu.memory_space<vmem>>, vector<1x1x128xf32>,
    return
  }
  func.func @transform_0(%arg0: i32, %arg1: memref<2xi32, #tpu.memory_space<smem>>) -> (i32, i32, i32) {
    %c0_i32 = arith.constant 0 : i32
    %c0_i32_0 = arith.constant 0 : i32
    %c0_i32_1 = arith.constant 0 : i32
    return %arg0, %c0_i32, %c0_i32_0 : i32, i32, i32
  }
  func.func @transform_1(%arg0: i32, %arg1: memref<2xi32, #tpu.memory_space<smem>>) -> (i32, i32, i32) {
    %0 = arith.index_cast %arg0 : i32 to index
    %1 = memref.load %arg1[%0] : memref<2xi32, #tpu.memory_space<smem>>
    %c0_i32 = arith.constant 0 : i32
    %c0_i32_0 = arith.constant 0 : i32
    %c0_i32_1 = arith.constant 0 : i32
    return %1, %c0_i32, %c0_i32_0 : i32, i32, i32
  }
  func.func @transform_2(%arg0: i32, %arg1: memref<2xi32, #tpu.memory_space<smem>>) -> (i32, i32) {
    %c0_i32 = arith.constant 0 : i32
    %c0_i32_0 = arith.constant 0 : i32
    %c0_i32_1 = arith.constant 0 : i32
    return %c0_i32, %c0_i32_0 : i32, i32
  }
  func.func @transform_3(%arg0: i32, %arg1: memref<2xi32, #tpu.memory_space<smem>>) -> (i32, i32) {
    %c0_i32 = arith.constant 0 : i32
    %c0_i32_0 = arith.constant 0 : i32
    %c0_i32_1 = arith.constant 0 : i32
    return %c0_i32, %c0_i32_0 : i32, i32
  }
  func.func @transform_4(%arg0: i32, %arg1: memref<2xi32, #tpu.memory_space<smem>>) -> (i32, i32) {
    %c0_i32 = arith.constant 0 : i32
    %c0_i32_0 = arith.constant 0 : i32
    %c0_i32_1 = arith.constant 0 : i32
    return %c0_i32, %c0_i32_0 : i32, i32
  }
  func.func @transform_5(%arg0: i32, %arg1: memref<2xi32, #tpu.memory_space<smem>>) -> (i32, i32) {
    %c0_i32 = arith.constant 0 : i32
    %c0_i32_0 = arith.constant 0 : i32
    %c0_i32_1 = arith.constant 0 : i32
    return %c0_i32, %c0_i32_0 : i32, i32
  }
  func.func @transform_6(%arg0: i32, %arg1: memref<2xi32, #tpu.memory_space<smem>>) -> (i32, i32) {
    %c0_i32 = arith.constant 0 : i32
    %c0_i32_0 = arith.constant 0 : i32
    %c0_i32_1 = arith.constant 0 : i32
    return %c0_i32, %c0_i32_0 : i32, i32
  }
  func.func @transform_7(%arg0: i32, %arg1: memref<2xi32, #tpu.memory_space<smem>>) -> (i32, i32) {
    %c0_i32 = arith.constant 0 : i32
    %c0_i32_0 = arith.constant 0 : i32
    %c0_i32_1 = arith.constant 0 : i32
    return %c0_i32, %c0_i32_0 : i32, i32
  }
  func.func @transform_8(%arg0: i32, %arg1: memref<2xi32, #tpu.memory_space<smem>>) -> (i32, i32, i32) {
    %c0_i32 = arith.constant 0 : i32
    %c0_i32_0 = arith.constant 0 : i32
    %c0_i32_1 = arith.constant 0 : i32
    return %arg0, %c0_i32, %c0_i32_0 : i32, i32, i32
  }
}

</mosaic_0001>

<bundles_post_ra>
// kernel: tpu_custom_call.1
= control target key start
LH: loop header
LB: loop body
LE: loop exit
PB: predicated region body
PF: predicated region fallthrough
CT: control target
= control target key end

     0   :  { %s6627_s0 = inlined_call_operand.hbm [shape: s32[2], index: 0, kind: input, shape index: {}]   ;;  %s6628_s1 = inlined_call_operand.hbm [shape: f32[2,1,768], index: 1, kind: input, shape index: {}]   ;;  %s6629_s2 = inlined_call_operand.hbm [shape: bf16[4,768,1024], index: 2, kind: input, shape index: {}]   ;;  %s6630_s3 = inlined_call_operand.hbm [shape: bf16[1024,128], index: 3, kind: input, shape index: {}]   ;;  %s6631_s4 = inlined_call_operand.hbm [shape: f32[1,128], index: 4, kind: input, shape index: {}]   ;;  %s6632_s5 = inlined_call_operand.hbm [shape: bf16[128,128], index: 5, kind: input, shape index: {}]   ;;  %s6633_s6 = inlined_call_operand.hbm [shape: f32[1,128], index: 6, kind: input, shape index: {}]   ;;  %s6634_s7 = inlined_call_operand.hbm [shape: bf16[128,128], index: 7, kind: input, shape index: {}]   ;;  %s6635_s8 = inlined_call_operand.hbm [shape: f32[1,128], index: 8, kind: input, shape index: {}]   ;;  %s6636_s9 = inlined_call_operand.hbm [shape: f32[2,1,128], index: 9, kind: output, shape index: {}]  }
   0x1   :  { %6648 = sst [smem:[#allocation30_spill]] %s6628_s1  ;;  %s5282_s11 = scalar_lea.hbm %s6627_s0, 16 }
   0x2   :  { %6649 = sst [smem:[#allocation31_spill]] %s6629_s2  ;;  %p5283_p0 = scmp.ne.s32.totalorder %s6627_s0, %s5282_s11 }
   0x3   :  { %6650 = sst [smem:[#allocation32_spill]] %s6630_s3  ;;  %p5286_p1 = scmp.lt.u32.totalorder %s5282_s11, %s6627_s0 }
   0x4   :  { %6651 = sst [smem:[#allocation33_spill]] %s6631_s4 }
   0x5   :  { %6652 = sst [smem:[#allocation34_spill]] %s6632_s5  ;;  %p5288_p2 = pnand %p5286_p1, %p5283_p0 }
   0x6   :  { %6653 = sst [smem:[#allocation35_spill]] %s6633_s6 }
   0x7   :  { %6654 = sst [smem:[#allocation36_spill]] %s6636_s9 }
   0x8   :  { %5291 = shalt.err (!%p5288_p2)  }
   0x9   :  { %s5634_s16 = smov [#allocation3]  }
   0xa   :  { %15 = dma.hbm_to_smem %s6627_s0, 16, %s5634_s16, [#allocation2] }
   0xb   :  { %5576 = dma.done.wait [#allocation2], 16 }
   0xc   :  { %5577 = vsyncadd [#allocation2], 4294967280 }
   0xd   :  { %17 = sfence }
   0xe   :  { %18 = vsyncpa [#allocation5], 0 }
   0xf   :  { %20 = vsyncpa [#allocation5 + $0x1], 0 }
  0x10   :  { %21 = vsyncpa [#allocation8], 0 }
  0x11   :  { %23 = vsyncpa [#allocation8 + $0x1], 0 }
  0x12   :  { %24 = vsyncpa [#allocation11], 0 }
  0x13   :  { %25 = vsyncpa [#allocation14], 0 }
  0x14   :  { %26 = vsyncpa [#allocation17], 0 }
  0x15   :  { %27 = vsyncpa [#allocation6], 0 }
  0x16   :  { %29 = vsyncpa [#allocation6 + $0x1], 0  ;;  %s5712_s19 = smov 0   ;;  %s5714_s20 = smov 0  }
  0x17   :  { %s5716_s21 = smov 0   ;;  %s5718_s22 = smov 0  }
  0x18   :  { %s5720_s0 = smov 0   ;;  %s5722_s23 = smov 0  }
  0x19   :  { %s5724_s24 = smov 0  }
  0x1a LB: > { %s5635_s25 = smov [#allocation9]   ;;  %s5748_s27 = sadd.s32 4294967295, %s5632_s24   ;;  %s5632_s24 = sphi %s5724_s24, %s6701_s24   ;;  %s5628_s23 = sphi %s5722_s23, %s6700_s23   ;;  %s5624_s0 = sphi %s5720_s0, %s6699_s0   ;;  %s5620_s22 = sphi %s5718_s22, %s6698_s22   ;;  %s5616_s21 = sphi %s5716_s21, %s6697_s21   ;;  %s5612_s20 = sphi %s5714_s20, %s6696_s20   ;;  %s5608_s19 = sphi %s5712_s19, %s6695_s19  }
  0x1b   : > { %s258_s26 = sshll.u32 %s5635_s25, 4  ;;  %p4366_p3 = scmp.ge.s32.totalorder %s5632_s24, 1  ;;  %s5753_s26 = int_to_ptr.vmem [resolvable:$true] %s258_s26 }
  0x1c   : > { %p6642_p4 = scmp.eq.s32.totalorder %s5748_s27, 0  ;;  %p246_p5 = scmp.lt.s32.totalorder %s5632_s24, 3 }
  0x1d   : > { %s5636_s29 = smov [#allocation10]   ;;  %s5637_s11 = smov [#allocation13]  }
  0x1e   : > { %p5755_p6 = pnand %p4366_p3, %p246_p5  ;;  %s272_s30 = sshll.u32 %s5636_s29, 4  ;;  %s5768_s30 = int_to_ptr.vmem [resolvable:$true] %s272_s30 }
  0x1f   : > { %s296_s12 = sshll.u32 %s5637_s11, 4  ;;  %s6658_s3 = sld [smem:[#allocation32_spill]]  ;;  %s5770_s12 = int_to_ptr.vmem [resolvable:$true] %s296_s12 }
  0x20   : > { %s6655_s28 = scalar_select %p5755_p6, 1, 0 }
  0x21   : > { %p5066_p8 = pneg %p5755_p6 }
  0x22   : > { %6656 = sst [smem:[#allocation29_spill]] %s6655_s28 }
  0x23   : > { %p5764_p9 = pnand %p5066_p8, %p6642_p4 }
  0x25   : > { %s5292_s15 = scalar_lea.hbm %s6658_s3, 8192  ;;  %p5780_p11 = pneg %p5764_p9 }
  0x26   : > { %p5293_p10 = scmp.ne.s32.totalorder %s6658_s3, %s5292_s15  ;;  %p5299_p0 = scmp.lt.u32.totalorder %s5292_s15, %s6658_s3 }
  0x28   : > { %p5295_p12 = pnand %p5780_p11, %p5293_p10 }
  0x2a   : > { %p5296_p13 = pneg %p5295_p12 }
  0x2c   : > { %p5301_p1 = pnand %p5299_p0, %p5296_p13 }
  0x2e   : > { %5304 = shalt.err (!%p5301_p1)
}
  0x2f   : > { %s5305_s11 = scalar_lea.vmem %s5753_s26, 8192  ;;  %p5313_p8 = scmp.lt.s32.totalorder %s5753_s26, %s5753_s26 }
  0x30   : > { %p5306_p2 = scmp.ne.s32.totalorder %s5753_s26, %s5305_s11  ;;  %p5314_p7 = scmp.lt.s32.totalorder %s5305_s11, %s5305_s11 }
  0x32   : > { %p5308_p3 = pnand %p5306_p2, %p5780_p11  ;;  %p5315_p10 = por %p5314_p7, %p5313_p8 }
  0x34   : > { %p5309_p5 = pneg %p5308_p3 }
  0x36   : > { %p5316_p12 = pnand %p5315_p10, %p5309_p5 }
  0x38   : > { %5319 = shalt.err (!%p5316_p12)
}
  0x39   : > { %s6640_s13 = smov 64   ;;  %s5639_s14 = smov 4  }
  0x3a   : > { %5069 = dma.hbm_to_vmem [thread:$0]  (!%p5764_p9), %s6658_s3, 8192, %s5753_s26, [#allocation8], %s6640_s13, %s6640_s13, %s5639_s14  }
  0x3b   : > { %s6660_s4 = sld [smem:[#allocation33_spill]] }
  0x41   : > { %s5320_s29 = scalar_lea.hbm %s6660_s4, 16 }
  0x42   : > { %p5321_p7 = scmp.ne.s32.totalorder %s6660_s4, %s5320_s29  ;;  %p5327_p1 = scmp.lt.u32.totalorder %s5320_s29, %s6660_s4 }
  0x44   : > { %p5323_p13 = pnand %p5321_p7, %p5780_p11 }
  0x46   : > { %p5324_p0 = pneg %p5323_p13 }
  0x48   : > { %p5329_p2 = pnand %p5327_p1, %p5324_p0 }
  0x4a   : > { %5332 = shalt.err (!%p5329_p2)
}
  0x4b   : > { %s5333_s26 = scalar_lea.vmem %s5768_s30, 16  ;;  %s5340_s9 = scalar_lea.vmem %s5768_s30, 32 }
  0x4c   : > { %p5334_p3 = scmp.ne.s32.totalorder %s5768_s30, %s5333_s26  ;;  %p5341_p10 = scmp.lt.s32.totalorder %s5768_s30, %s5768_s30 }
  0x4d   : > { %p5342_p12 = scmp.lt.s32.totalorder %s5340_s9, %s5333_s26 }
  0x4e   : > { %p5336_p5 = pnand %p5334_p3, %p5780_p11 }
  0x4f   : > { %p5343_p7 = por %p5342_p12, %p5341_p10 }
  0x50   : > { %p5337_p8 = pneg %p5336_p5 }
  0x52   : > { %p5344_p13 = pnand %p5343_p7, %p5337_p8 }
  0x54   : > { %5347 = shalt.err (!%p5344_p13)
}
  0x55   : > { %5072 = dma.hbm_to_vmem [thread:$0]  (!%p5764_p9), %s6660_s4, 16, %s5768_s30, [#allocation11]  }
  0x56   : > { %s6661_s6 = sld [smem:[#allocation35_spill]] }
  0x5c   : > { %s5348_s17 = scalar_lea.hbm %s6661_s6, 16 }
  0x5d   : > { %p5349_p0 = scmp.ne.s32.totalorder %s6661_s6, %s5348_s17  ;;  %p5355_p3 = scmp.lt.u32.totalorder %s5348_s17, %s6661_s6 }
  0x5f   : > { %p5351_p1 = pnand %p5349_p0, %p5780_p11 }
  0x61   : > { %p5352_p2 = pneg %p5351_p1 }
  0x63   : > { %p5357_p5 = pnand %p5355_p3, %p5352_p2 }
  0x65   : > { %5360 = shalt.err (!%p5357_p5)
}
  0x66   : > { %s5361_s30 = scalar_lea.vmem %s5770_s12, 16  ;;  %s5368_s9 = scalar_lea.vmem %s5770_s12, 32 }
  0x67   : > { %p5362_p8 = scmp.ne.s32.totalorder %s5770_s12, %s5361_s30  ;;  %p5369_p7 = scmp.lt.s32.totalorder %s5770_s12, %s5770_s12 }
  0x68   : > { %p5370_p13 = scmp.lt.s32.totalorder %s5368_s9, %s5361_s30 }
  0x69   : > { %p5364_p10 = pnand %p5362_p8, %p5780_p11 }
  0x6a   : > { %p5371_p0 = por %p5370_p13, %p5369_p7 }
  0x6b   : > { %p5365_p12 = pneg %p5364_p10 }
  0x6d   : > { %p5372_p1 = pnand %p5371_p0, %p5365_p12 }
  0x6f   : > { %5375 = shalt.err (!%p5372_p1)
}
  0x70   : > { %5078 = dma.hbm_to_vmem [thread:$0]  (!%p5764_p9), %s6661_s6, 16, %s5770_s12, [#allocation14]  }
  0x71   : > { %s5640_s15 = smov [#allocation12]   ;;  %s5641_s17 = smov [#allocation15]  }
  0x72   : > { %s282_s16 = sshll.u32 %s5640_s15, 4  ;;  %s306_s25 = sshll.u32 %s5641_s17, 4  ;;  %s283_s16 = int_to_ptr.vmem [resolvable:$true] %s282_s16  ;;  %s307_s25 = int_to_ptr.vmem [resolvable:$true] %s306_s25 }
  0x73   : > { %s6662_s5 = sld [smem:[#allocation34_spill]] }
  0x79   : > { %s5376_s26 = scalar_lea.hbm %s6662_s5, 1024 }
  0x7a   : > { %p5377_p2 = scmp.ne.s32.totalorder %s6662_s5, %s5376_s26  ;;  %p5383_p8 = scmp.lt.u32.totalorder %s5376_s26, %s6662_s5 }
  0x7c   : > { %p5379_p3 = pnand %p5377_p2, %p5780_p11 }
  0x7e   : > { %p5380_p5 = pneg %p5379_p3 }
  0x80   : > { %p5385_p10 = pnand %p5383_p8, %p5380_p5 }
  0x82   : > { %5388 = shalt.err (!%p5385_p10)
}
  0x83   : > { %s5389_s12 = scalar_lea.vmem %s283_s16, 1024  ;;  %p5397_p0 = scmp.lt.s32.totalorder %s283_s16, %s283_s16 }
  0x84   : > { %p5390_p12 = scmp.ne.s32.totalorder %s283_s16, %s5389_s12  ;;  %p5398_p1 = scmp.lt.s32.totalorder %s5389_s12, %s5389_s12 }
  0x86   : > { %p5392_p7 = pnand %p5390_p12, %p5780_p11  ;;  %p5399_p4 = por %p5398_p1, %p5397_p0 }
  0x88   : > { %p5393_p13 = pneg %p5392_p7 }
  0x8a   : > { %p5400_p6 = pnand %p5399_p4, %p5393_p13 }
  0x8c   : > { %5403 = shalt.err (!%p5400_p6)
}
  0x8d   : > { %s6663_s28 = smov 64   ;;  %s5404_s11 = scalar_lea.hbm %s6634_s7, 1024 }
  0x8e   : > { %5075 = dma.hbm_to_vmem [thread:$0]  (!%p5764_p9), %s6662_s5, 1024, %s283_s16, [#allocation11], %s6663_s28, %s6663_s28, %s5639_s14  }
  0x8f   : > { %p5405_p4 = scmp.ne.s32.totalorder %s6634_s7, %s5404_s11  ;;  %p5411_p3 = scmp.lt.u32.totalorder %s5404_s11, %s6634_s7 }
  0x91   : > { %p5407_p6 = pnand %p5405_p4, %p5780_p11 }
  0x93   : > { %p5408_p2 = pneg %p5407_p6 }
  0x95   : > { %p5413_p5 = pnand %p5411_p3, %p5408_p2 }
  0x97   : > { %5416 = shalt.err (!%p5413_p5)
}
  0x98   : > { %s5417_s12 = scalar_lea.vmem %s307_s25, 1024  ;;  %p5425_p7 = scmp.lt.s32.totalorder %s307_s25, %s307_s25 }
  0x99   : > { %p5418_p8 = scmp.ne.s32.totalorder %s307_s25, %s5417_s12  ;;  %p5426_p13 = scmp.lt.s32.totalorder %s5417_s12, %s5417_s12 }
  0x9b   : > { %p5420_p10 = pnand %p5418_p8, %p5780_p11  ;;  %p5427_p0 = por %p5426_p13, %p5425_p7 }
  0x9d   : > { %p5421_p12 = pneg %p5420_p10 }
  0x9f   : > { %p5428_p1 = pnand %p5427_p0, %p5421_p12 }
  0xa1   : > { %5431 = shalt.err (!%p5428_p1)
}
  0xa2   : > { %5081 = dma.hbm_to_vmem [thread:$0]  (!%p5764_p9), %s6634_s7, 1024, %s307_s25, [#allocation14], %s6663_s28, %s6663_s28, %s5639_s14  }
  0xa3   : > { %s5642_s15 = smov [#allocation16]   ;;  %s5432_s26 = scalar_lea.hbm %s6635_s8, 16 }
  0xa4   : > { %s320_s17 = sshll.u32 %s5642_s15, 4  ;;  %p5433_p4 = scmp.ne.s32.totalorder %s6635_s8, %s5432_s26  ;;  %s321_s17 = int_to_ptr.vmem [resolvable:$true] %s320_s17 }
  0xa5   : > { %p5439_p3 = scmp.lt.u32.totalorder %s5432_s26, %s6635_s8 }
  0xa6   : > { %p5435_p6 = pnand %p5433_p4, %p5780_p11 }
  0xa8   : > { %p5436_p2 = pneg %p5435_p6 }
  0xaa   : > { %p5441_p5 = pnand %p5439_p3, %p5436_p2 }
  0xac   : > { %5444 = shalt.err (!%p5441_p5)
}
  0xad   : > { %s5445_s14 = scalar_lea.vmem %s321_s17, 16  ;;  %s5452_s25 = scalar_lea.vmem %s321_s17, 32 }
  0xae   : > { %p5446_p8 = scmp.ne.s32.totalorder %s321_s17, %s5445_s14  ;;  %p5453_p7 = scmp.lt.s32.totalorder %s321_s17, %s321_s17 }
  0xaf   : > { %p5454_p13 = scmp.lt.s32.totalorder %s5452_s25, %s5445_s14 }
  0xb0   : > { %p5448_p10 = pnand %p5446_p8, %p5780_p11 }
  0xb1   : > { %p5455_p0 = por %p5454_p13, %p5453_p7 }
  0xb2   : > { %p5449_p12 = pneg %p5448_p10 }
  0xb4   : > { %p5456_p1 = pnand %p5455_p0, %p5449_p12 }
  0xb6   : > { %5459 = shalt.err (!%p5456_p1)
}
  0xb7   : > { %5084 = dma.hbm_to_vmem [thread:$0]  (!%p5764_p9), %s6635_s8, 16, %s321_s17, [#allocation17]  }
  0xb8   : > { %s4365_s10 = sadd.s32 4294967294, %s5632_s24   ;;  %s5914_s18 = sadd.s32 1, %s5632_s24  }
  0xb9   : > { %s39_s13 = ssub.s32 %s5632_s24, %s5914_s18  ;;  %s42_s15 = sadd.s32 1, %s5628_s23 }
  0xba   : > { %p40_p11 = scmp.eq.s32.totalorder %s39_s13, 0  ;;  %p49_p4 = scmp.ne.s32.totalorder %s5628_s23, %s5624_s0 }
  0xbb   : > { %p50_p6 = scmp.eq.s32.totalorder %s5632_s24, 0  ;;  %p55_p9 = scmp.ne.s32.totalorder %s5624_s0, %s5620_s22 }
  0xbc   : > { %s5925_s17 = scalar_select %p40_p11, %s5628_s23, %s42_s15  }
  0xbd   : > { %p5930_p2 = por %p50_p6, %p49_p4  ;;  %p6665_p3 = scmp.eq.s32.totalorder %s5748_s27, 0 }
  0xbe   : > { %s65_s26 = sld [smem:[#allocation3 + %s5632_s24]]  ;;  %s70_s9 = sadd.s32 1, %s5616_s21 }
  0xbf   : > { %p5939_p5 = por %p6665_p3, %p55_p9  ;;  %s66_s30 = sld [smem:[#allocation3 + %s5914_s18]] }
  0xc0   : > { %p77_p8 = scmp.ne.s32.totalorder %s5616_s21, %s5612_s20  ;;  %p83_p10 = scmp.ne.s32.totalorder %s5612_s20, %s5608_s19 }
  0xc1   : > { %s6666_s11 = scalar_select %p5939_p5, 1, 0 }
  0xc2   : > { %p233_p12 = scmp.eq.s32.totalorder %s5748_s27, 1  ;;  %p5951_p7 = por %p77_p8, %p50_p6 }
  0xc3   : > { %p239_p13 = scmp.eq.s32.totalorder %s4365_s10, 1  ;;  %p6668_p0 = pmov %p6665_p3 }
  0xc4   : > { %p5964_p11 = por %p233_p12, %p49_p4  ;;  %p6644_p6 = scmp.lt.s32.totalorder %s5632_s24, 2 }
  0xc5   : > { %p5957_p1 = por %p83_p10, %p6668_p0  ;;  %p5971_p3 = por %p239_p13, %p55_p9 }
  0xc6   : > { %s6670_s14 = scalar_select %p5964_p11, 1, 0 }
  0xc7   : > { %s6669_s12 = scalar_select %p5957_p1, 1, 0 }
  0xc8   : > { %s6671_s25 = scalar_select %p5971_p3, 1, 0 }
  0xc9   : > { %s67_s19 = ssub.s32 %s65_s26, %s66_s30  ;;  %s331_s28 = sand.u32 1, %s5628_s23  }
  0xca   : > { %p68_p8 = scmp.eq.s32.totalorder %s67_s19, 0  ;;  %s5028_s16 = smul.u32 6, %s331_s28 }
  0xcb   : > { %p5981_p10 = pnand %p6644_p6, %p5930_p2  ;;  %s5029_s15 = smul.u32 96, %s5632_s24 }
  0xcc   : > { %s5986_s13 = scalar_select %p68_p8, %s5616_s21, %s70_s9  }
  0xcd   : > { %s335_s3 = scalar_lea.vmem [#allocation4], %s5028_s16  ;;  %s6673_s1 = sld [smem:[#allocation30_spill]] }
  0xce   : > { %s343_s4 = sshll.u32 %s335_s3, 4  ;;  %s332_s29 = scalar_lea.sflag [#allocation5], %s331_s28  ;;  %s5994_s4 = int_to_ptr.vmem [resolvable:$true] %s343_s4 }
  0xcf   : > { %p5462_p9 = pneg %p5981_p10 }
  0xd3   : > { %s5992_s26 = scalar_lea.hbm %s6673_s1, %s5029_s15  ;;  %s5465_s5 = scalar_lea.hbm %s6673_s1, 192 }
  0xd4   : > { %s5460_s30 = scalar_lea.hbm %s5992_s26, 96  ;;  %p5466_p13 = scmp.lt.u32.totalorder %s5992_s26, %s6673_s1 }
  0xd5   : > { %p5461_p4 = scmp.ne.s32.totalorder %s5992_s26, %s5460_s30  ;;  %p5467_p0 = scmp.lt.u32.totalorder %s5465_s5, %s5460_s30 }
  0xd6   : > { %p5469_p6 = scmp.lt.u32.totalorder %s5460_s30, %s5992_s26 }
  0xd7   : > { %p5463_p2 = pnand %p5462_p9, %p5461_p4  ;;  %p5468_p8 = por %p5467_p0, %p5466_p13 }
  0xd9   : > { %p5464_p12 = pneg %p5463_p2  ;;  %p5470_p3 = por %p5469_p6, %p5468_p8 }
  0xdb   : > { %p5471_p11 = pnand %p5470_p3, %p5464_p12 }
  0xdd   : > { %5474 = shalt.err (!%p5471_p11)
}
  0xde   : > { %s5475_s28 = scalar_lea.vmem %s5994_s4, 96  ;;  %s5643_s16 = smov [#allocation4]  }
  0xdf   : > { %p5476_p4 = scmp.ne.s32.totalorder %s5994_s4, %s5475_s28  ;;  %s5480_s15 = sshll.u32 %s5643_s16, 4  ;;  %s5481_s15 = int_to_ptr.vmem [resolvable:$false] %s5480_s15 }
  0xe0   : > { %s5482_s3 = scalar_lea.vmem %s5481_s15, 192  ;;  %p5483_p5 = scmp.lt.s32.totalorder %s5994_s4, %s5481_s15 }
  0xe1   : > { %p5478_p2 = pnand %p5476_p4, %p5462_p9  ;;  %p5484_p13 = scmp.lt.s32.totalorder %s5482_s3, %s5475_s28 }
  0xe3   : > { %p5479_p1 = pneg %p5478_p2  ;;  %p5485_p0 = por %p5484_p13, %p5483_p5 }
  0xe5   : > { %p5486_p6 = pnand %p5485_p0, %p5479_p1 }
  0xe7   : > { %5489 = shalt.err (!%p5486_p6)
}
  0xe8   : > { %5088 = dma.hbm_to_vmem [thread:$0]  (!%p5981_p10), %s5992_s26, 96, %s5994_s4, %s332_s29  }
  0xe9   : > { %p6674_p11 = scmp.lt.s32.totalorder %s5632_s24, 2  ;;  %s352_s9 = sand.u32 1, %s5616_s21  }
  0xea   : > { %s5047_s10 = scalar_select %p5951_p7, [#allocation3], [#allocation19] }
  0xeb   : > { %p6025_p3 = pnand %p6674_p11, %p5951_p7  ;;  %s5030_s5 = smul.u32 3072, %s352_s9 }
  0xec   : > { %s5048_s6 = scalar_select %p5951_p7, %s5632_s24, 0 }
  0xed   : > { %p6676_p5 = pmov %p6674_p11  ;;  %s350_s4 = sand.u32 1, %s5632_s24  }
  0xee   : > { %s354_s26 = scalar_lea.vmem [#allocation7], %s5030_s5  ;;  %s6678_s3 = sld [smem:[#allocation31_spill]] }
  0xef   : > { %s6703_s10 = smov (!%p6676_p5, %s5047_s10), [#allocation20]  ;;  %p6677_p1 = pmov %p6676_p5 }
  0xf0   : > { %s362_s29 = sshll.u32 %s354_s26, 4  ;;  %s6047_s2 = scalar_lea.sflag [#allocation8], %s350_s4  ;;  %s6040_s29 = int_to_ptr.vmem [resolvable:$true] %s362_s29 }
  0xf1   : > { %s6705_s6 = smov (!%p6677_p1, %s5048_s6), 0  ;;  %p5492_p10 = pneg %p6025_p3 }
  0xf2   : > { %s355_s19 = sld [smem:[%s6703_s10 + %s6705_s6]] }
  0xf4   : > { %s5495_s6 = scalar_lea.hbm %s6678_s3, 196608 }
  0xf8   : > { %s5031_s28 = smul.u32 49152, %s355_s19 }
  0xfa   : > { %s6045_s1 = scalar_lea.hbm %s6678_s3, %s5031_s28 }
  0xfb   : > { %s5490_s9 = scalar_lea.hbm %s6045_s1, 49152  ;;  %p5496_p8 = scmp.lt.u32.totalorder %s6045_s1, %s6678_s3 }
  0xfc   : > { %p5491_p7 = scmp.ne.s32.totalorder %s6045_s1, %s5490_s9  ;;  %p5497_p4 = scmp.lt.u32.totalorder %s5495_s6, %s5490_s9 }
  0xfd   : > { %p5499_p13 = scmp.lt.u32.totalorder %s5490_s9, %s6045_s1 }
  0xfe   : > { %p5493_p9 = pnand %p5492_p10, %p5491_p7  ;;  %p5498_p2 = por %p5497_p4, %p5496_p8 }
 0x100   : > { %p5494_p12 = pneg %p5493_p9  ;;  %p5500_p0 = por %p5499_p13, %p5498_p2 }
 0x102   : > { %p5501_p6 = pnand %p5500_p0, %p5494_p12 }
 0x104   : > { %5504 = shalt.err (!%p5501_p6)
}
 0x105   : > { %s5505_s4 = scalar_lea.vmem %s6040_s29, 49152  ;;  %s5644_s28 = smov [#allocation7]  }
 0x106   : > { %p5506_p11 = scmp.ne.s32.totalorder %s6040_s29, %s5505_s4  ;;  %s5510_s16 = sshll.u32 %s5644_s28, 4  ;;  %s5511_s16 = int_to_ptr.vmem [resolvable:$false] %s5510_s16 }
 0x107   : > { %s5512_s15 = scalar_lea.vmem %s5511_s16, 98304  ;;  %p5513_p7 = scmp.lt.s32.totalorder %s6040_s29, %s5511_s16 }
 0x108   : > { %p5508_p5 = pnand %p5506_p11, %p5492_p10  ;;  %p5514_p9 = scmp.lt.s32.totalorder %s5512_s15, %s5505_s4 }
 0x10a   : > { %p5509_p1 = pneg %p5508_p5  ;;  %p5515_p8 = por %p5514_p9, %p5513_p7 }
 0x10c   : > { %p5516_p4 = pnand %p5515_p8, %p5509_p1 }
 0x10e   : > { %5519 = shalt.err (!%p5516_p4)
}
 0x10f   : > { %s5645_s9 = smov 512   ;;  %s5646_s10 = smov 32  }
 0x110   : > { %5093 = dma.hbm_to_vmem [thread:$0]  (!%p6025_p3), %s6045_s1, 49152, %s6040_s29, %s6047_s2, %s5645_s9, %s5645_s9, %s5646_s10  }
 0x111   : > { %s6679_s5 = sld [smem:[#allocation29_spill]] }
 0x117   : > { %p6680_p10 = scmp.ne.s32.totalorder %s6679_s5, 0 }
 0x118   : > { %s6078_s6 = sand.u32 (!%p6680_p10), 1, %s5624_s0   ;;  %p6681_p12 = scmp.ne.s32.totalorder (!%p6680_p10), %s6666_s11, 0 }
 0x119   : > { %374 = sbr.rel (%p6680_p10) target bundleno = 1906 (0x772), region = 52  ;;  %s377_s26 = scalar_lea.sflag (!%p6680_p10), [#allocation5], %s6078_s6 }
 0x11a   : > { %s5032_s19 = smul.u32 (!%p6680_p10), 6, %s6078_s6 }
 0x11c   : > { %s6082_s4 = scalar_lea.vmem (!%p6680_p10), [#allocation4], %s5032_s19 }
 0x120   : > { %5579 = dma.done.wait (%p6681_p12), %s377_s26, 96  }
 0x121   : > { %5581 = vsyncadd (%p6681_p12), %s377_s26, 4294967200  ;;  %s385_s1 = sand.u32 1, %s5748_s27   ;;  %s387_s30 = sand.u32 1, %s5612_s20  }
 0x122   : > { %s5033_s29 = smul.u32 3072, %s387_s30  ;;  %s386_s2 = scalar_lea.sflag [#allocation8], %s385_s1 }
 0x123   : > { %p6682_p3 = scmp.ne.s32.totalorder %s6669_s12, 0 }
 0x124   : > { %s6090_s28 = scalar_lea.vmem [#allocation7], %s5033_s29 }
 0x125   : > { %5583 = dma.done.wait (%p6682_p3), %s386_s2, 49152  }
 0x126   : > { %5585 = vsyncadd (%p6682_p3), %s386_s2, 4294918144  ;;  %p6683_p2 = scmp.eq.s32.totalorder %s5748_s27, 0 }
 0x128   : > { %5587 = dma.done.wait (%p6683_p2), [#allocation8], 8192   ;;  %p6684_p13 = pmov %p6683_p2 }
 0x129   : > { %p6685_p0 = pmov %p6683_p2 }
 0x12a   : > { %5589 = vsyncadd (%p6684_p13), [#allocation8], 4294959104 }
 0x12b   : > { %5591 = dma.done.wait (%p6685_p0), [#allocation11], 1040   ;;  %p6686_p6 = pmov %p6685_p0 }
 0x12c   : > { %p6687_p11 = pmov %p6685_p0 }
 0x12d   : > { %5593 = vsyncadd (%p6686_p6), [#allocation11], 4294966256 }
 0x12e   : > { %5595 = dma.done.wait (%p6687_p11), [#allocation14], 1040   ;;  %p6688_p5 = pmov %p6685_p0 }
 0x12f   : > { %p6689_p1 = pmov %p6685_p0 }
 0x130   : > { %5597 = vsyncadd (%p6688_p5), [#allocation14], 4294966256 }
 0x131   : > { %5599 = dma.done.wait (%p6689_p1), [#allocation17], 16   ;;  %p6690_p7 = pmov %p6685_p0 }
 0x132   : > { %v490_v0 = vld [vmem:[%s6090_s28] sm:$0xff]  ;;  %v491_v2 = vld [vmem:[%s6090_s28 + $0x8] sm:$0xff]  ;;  %v454_v32 = vlaneseq  ;;  %v6145_v56 = vld [vmem:[%s6082_s4] sm:$0x3f]  ;;  %vm5648_vm0 = vmmov 0   ;;  %vm4193_vm2 = vcmask 1040384  }
 0x133   : > { %5601 = vsyncadd (%p6690_p7), [#allocation17], 4294967280  ;;  %v494_v1 = vld [vmem:[%s6090_s28 + $0x20] sm:$0xff]  ;;  %v495_v4 = vld [vmem:[%s6090_s28 + $0x28] sm:$0xff]  ;;  %s4847_s11 = sshll.u32 %s5748_s27, 4  ;;  %s449_s12 = scalar_lea.vmem [#allocation18], %s6078_s6 }
 0x134   : > { %v4384_v3 = vcombine.high %v490_v0, %v494_v1  ;;  %v4383_v5 = vcombine.low %v490_v0, %v494_v1  ;;  %v498_v6 = vld [vmem:[%s6090_s28 + $0x40] sm:$0xff]  ;;  %v4386_v8 = vcombine.high %v491_v2, %v495_v4  ;;  %v4385_v9 = vcombine.low %v491_v2, %v495_v4  ;;  %v499_v11 = vld [vmem:[%s6090_s28 + $0x48] sm:$0xff]  ;;  %s4219_s16 = sshll.u32 %s449_s12, 4  ;;  %s6691_s10 = sld [smem:[#allocation36_spill]]  ;;  %s6576_s16 = int_to_ptr.vmem [resolvable:$true] %s4219_s16 }
 0x135   : > { %v502_v7 = vld [vmem:[%s6090_s28 + $0x60] sm:$0xff]  ;;  %v503_v12 = vld [vmem:[%s6090_s28 + $0x68] sm:$0xff]  ;;  %v6135_v41 = vshrl.u32 %v454_v32, 7  ;;  %s4207_s19 = scalar_lea.sflag [#allocation6], %s6078_s6  ;;  %s5520_s26 = scalar_lea.vmem %s6576_s16, 16 }
 0x136   : > { %v4392_v10 = vcombine.high %v498_v6, %v502_v7  ;;  %v506_v13 = vld [vmem:[%s6090_s28 + $0x80] sm:$0xff]  ;;  %2794 = vmatprep.subr.bf16.mxu0 %v4384_v3  ;;  %v4394_v14 = vcombine.high %v499_v11, %v503_v12  ;;  %v507_v16 = vld [vmem:[%s6090_s28 + $0x88] sm:$0xff]  ;;  %2917 = vmatprep.subr.bf16.mxu1 %v4386_v8  ;;  %v4391_v18 = vcombine.low %v498_v6, %v502_v7  ;;  %p5521_p9 = scmp.ne.s32.totalorder %s6576_s16, %s5520_s26  ;;  %p6692_p8 = scmp.ne.s32.totalorder %s6670_s14, 0 }
 0x137   : > { %v510_v15 = vld [vmem:[%s6090_s28 + $0xa0] sm:$0xff]  ;;  %v511_v17 = vld [vmem:[%s6090_s28 + $0xa8] sm:$0xff]  ;;  %2795 = vmatpush1.bf16.msra.mxu0 %v4383_v5  ;;  %2918 = vmatpush1.bf16.msra.mxu1 %v4385_v9  ;;  %v4393_v19 = vcombine.low %v499_v11, %v503_v12  ;;  %v460_v50 = vsub.s32 1, %v6135_v41  ;;  %s5649_s27 = smov [#allocation18]  }
 0x138   : > { %2796 = vmatprep.subr.bf16.mxu0 %v4392_v10  ;;  %v4400_v20 = vcombine.high %v506_v13, %v510_v15  ;;  %2919 = vmatprep.subr.bf16.mxu1 %v4394_v14  ;;  %v4402_v21 = vcombine.high %v507_v16, %v511_v17  ;;  %v514_v22 = vld [vmem:[%s6090_s28 + $0xc0] sm:$0xff]  ;;  %v515_v24 = vld [vmem:[%s6090_s28 + $0xc8] sm:$0xff]  ;;  %v4399_v26 = vcombine.low %v506_v13, %v510_v15  ;;  %p5522_p4 = pnand %p5521_p9, %p6692_p8 }
 0x139   : > { %v518_v23 = vld [vmem:[%s6090_s28 + $0xe0] sm:$0xff]  ;;  %v519_v25 = vld [vmem:[%s6090_s28 + $0xe8] sm:$0xff]  ;;  %v4401_v27 = vcombine.low %v507_v16, %v511_v17  ;;  %v461_v60 = vrot.slane %v6145_v56, %v460_v50 }
 0x13a   : > { %v4408_v28 = vcombine.high %v514_v22, %v518_v23  ;;  %v4410_v29 = vcombine.high %v515_v24, %v519_v25  ;;  %v522_v30 = vld [vmem:[%s6090_s28 + $0x100] sm:$0xff]  ;;  %v523_v33 = vld [vmem:[%s6090_s28 + $0x108] sm:$0xff]  ;;  %v4407_v35 = vcombine.low %v514_v22, %v518_v23  ;;  %v4409_v36 = vcombine.low %v515_v24, %v519_v25  ;;  %s6574_s5 = scalar_lea.hbm %s6691_s10, %s4847_s11  ;;  %p5523_p10 = pneg %p5522_p4 }
 0x13b   : > { %2797 = vmatpush1.bf16.msra.mxu0 %v4391_v18  ;;  %2920 = vmatpush1.bf16.msra.mxu1 %v4393_v19  ;;  %v526_v31 = vld [vmem:[%s6090_s28 + $0x120] sm:$0xff]  ;;  %v527_v34 = vld [vmem:[%s6090_s28 + $0x128] sm:$0xff]  ;;  %v6152_v0 = vpack.c.bf16 %v461_v60, %v461_v60 }
 0x13c   : > { %2798 = vmatprep.subr.bf16.mxu0 %v4400_v20  ;;  %2921 = vmatprep.subr.bf16.mxu1 %v4402_v21  ;;  %v4416_v37 = vcombine.high %v522_v30, %v526_v31  ;;  %v4418_v38 = vcombine.high %v523_v33, %v527_v34  ;;  %v530_v39 = vld [vmem:[%s6090_s28 + $0x140] sm:$0xff]  ;;  %v531_v42 = vld [vmem:[%s6090_s28 + $0x148] sm:$0xff]  ;;  %v4415_v44 = vcombine.low %v522_v30, %v526_v31 }
 0x13d   : > { %v534_v40 = vld [vmem:[%s6090_s28 + $0x160] sm:$0xff]  ;;  %v535_v43 = vld [vmem:[%s6090_s28 + $0x168] sm:$0xff]  ;;  %v4417_v45 = vcombine.low %v523_v33, %v527_v34  ;;  %2826 = vmatprep.mubr.bf16.mxu0 %v6152_v0  ;;  %2949 = vmatprep.mubr.bf16.mxu1 %v6152_v0 }
 0x13e   : > { %v4424_v46 = vcombine.high %v530_v39, %v534_v40  ;;  %v4426_v47 = vcombine.high %v531_v42, %v535_v43  ;;  %v538_v48 = vld [vmem:[%s6090_s28 + $0x180] sm:$0xff]  ;;  %v539_v51 = vld [vmem:[%s6090_s28 + $0x188] sm:$0xff]  ;;  %v4423_v53 = vcombine.low %v530_v39, %v534_v40  ;;  %v4425_v54 = vcombine.low %v531_v42, %v535_v43 }
 0x13f   : > { %2799 = vmatpush1.bf16.msra.mxu0 %v4399_v26  ;;  %2922 = vmatpush1.bf16.msra.mxu1 %v4401_v27  ;;  %v542_v49 = vld [vmem:[%s6090_s28 + $0x1a0] sm:$0xff]  ;;  %v543_v52 = vld [vmem:[%s6090_s28 + $0x1a8] sm:$0xff] }
 0x140   : > { %2800 = vmatprep.subr.bf16.mxu0 %v4408_v28  ;;  %2923 = vmatprep.subr.bf16.mxu1 %v4410_v29  ;;  %v4432_v55 = vcombine.high %v538_v48, %v542_v49  ;;  %v4434_v57 = vcombine.high %v539_v51, %v543_v52  ;;  %v546_v58 = vld [vmem:[%s6090_s28 + $0x1c0] sm:$0xff]  ;;  %v547_v61 = vld [vmem:[%s6090_s28 + $0x1c8] sm:$0xff]  ;;  %v4431_v63 = vcombine.low %v538_v48, %v542_v49 }
 0x141   : > { %v550_v59 = vld [vmem:[%s6090_s28 + $0x1e0] sm:$0xff]  ;;  %v551_v62 = vld [vmem:[%s6090_s28 + $0x1e8] sm:$0xff]  ;;  %v4433_v1 = vcombine.low %v539_v51, %v543_v52 }
 0x142   : > { %v4440_v2 = vcombine.high %v546_v58, %v550_v59  ;;  %v4442_v3 = vcombine.high %v547_v61, %v551_v62  ;;  %v554_v4 = vld [vmem:[%s6090_s28 + $0x200] sm:$0xff]  ;;  %v555_v6 = vld [vmem:[%s6090_s28 + $0x208] sm:$0xff]  ;;  %v4439_v8 = vcombine.low %v546_v58, %v550_v59  ;;  %v4441_v9 = vcombine.low %v547_v61, %v551_v62 }
 0x143   : > { %2801 = vmatpush1.bf16.msra.mxu0 %v4407_v35  ;;  %2924 = vmatpush1.bf16.msra.mxu1 %v4409_v36  ;;  %v558_v5 = vld [vmem:[%s6090_s28 + $0x220] sm:$0xff]  ;;  %v559_v7 = vld [vmem:[%s6090_s28 + $0x228] sm:$0xff] }
 0x144   : > { %2802 = vmatprep.subr.bf16.mxu0 %v4416_v37  ;;  %2925 = vmatprep.subr.bf16.mxu1 %v4418_v38  ;;  %v4448_v10 = vcombine.high %v554_v4, %v558_v5  ;;  %v4450_v11 = vcombine.high %v555_v6, %v559_v7  ;;  %v562_v12 = vld [vmem:[%s6090_s28 + $0x240] sm:$0xff]  ;;  %v563_v14 = vld [vmem:[%s6090_s28 + $0x248] sm:$0xff]  ;;  %v4447_v16 = vcombine.low %v554_v4, %v558_v5  ;;  %v456_v4 = vsub.s32 0, %v6135_v41 }
 0x145   : > { %v566_v13 = vld [vmem:[%s6090_s28 + $0x260] sm:$0xff]  ;;  %v567_v15 = vld [vmem:[%s6090_s28 + $0x268] sm:$0xff]  ;;  %v4449_v17 = vcombine.low %v555_v6, %v559_v7 }
 0x146   : > { %v4456_v18 = vcombine.high %v562_v12, %v566_v13  ;;  %v4458_v19 = vcombine.high %v563_v14, %v567_v15  ;;  %v570_v20 = vld [vmem:[%s6090_s28 + $0x280] sm:$0xff]  ;;  %v571_v22 = vld [vmem:[%s6090_s28 + $0x288] sm:$0xff]  ;;  %v4455_v24 = vcombine.low %v562_v12, %v566_v13  ;;  %v4457_v25 = vcombine.low %v563_v14, %v567_v15 }
 0x147   : > { %2803 = vmatpush1.bf16.msra.mxu0 %v4415_v44  ;;  %2926 = vmatpush1.bf16.msra.mxu1 %v4417_v45  ;;  %v574_v21 = vld [vmem:[%s6090_s28 + $0x2a0] sm:$0xff]  ;;  %v575_v23 = vld [vmem:[%s6090_s28 + $0x2a8] sm:$0xff]  ;;  %v457_v14 = vrot.slane %v6145_v56, %v456_v4 }
 0x148   : > { %2804 = vmatprep.subr.bf16.mxu0 %v4424_v46  ;;  %2927 = vmatprep.subr.bf16.mxu1 %v4426_v47  ;;  %v4464_v26 = vcombine.high %v570_v20, %v574_v21  ;;  %v4466_v27 = vcombine.high %v571_v22, %v575_v23  ;;  %v578_v28 = vld [vmem:[%s6090_s28 + $0x2c0] sm:$0xff]  ;;  %v579_v30 = vld [vmem:[%s6090_s28 + $0x2c8] sm:$0xff]  ;;  %v4463_v33 = vcombine.low %v570_v20, %v574_v21 }
 0x149   : > { %v582_v29 = vld [vmem:[%s6090_s28 + $0x2e0] sm:$0xff]  ;;  %v583_v31 = vld [vmem:[%s6090_s28 + $0x2e8] sm:$0xff]  ;;  %v4465_v34 = vcombine.low %v571_v22, %v575_v23  ;;  %v6198_v22 = vpack.c.bf16 %v457_v14, %v457_v14 }
 0x14a   : > { %v4472_v35 = vcombine.high %v578_v28, %v582_v29  ;;  %v4474_v36 = vcombine.high %v579_v30, %v583_v31  ;;  %v586_v37 = vld [vmem:[%s6090_s28 + $0x300] sm:$0xff]  ;;  %v587_v39 = vld [vmem:[%s6090_s28 + $0x308] sm:$0xff]  ;;  %v4471_v42 = vcombine.low %v578_v28, %v582_v29  ;;  %v4473_v43 = vcombine.low %v579_v30, %v583_v31 }
 0x14b   : > { %2805 = vmatpush1.bf16.msra.mxu0 %v4423_v53  ;;  %2928 = vmatpush1.bf16.msra.mxu1 %v4425_v54  ;;  %v590_v38 = vld [vmem:[%s6090_s28 + $0x320] sm:$0xff]  ;;  %v591_v40 = vld [vmem:[%s6090_s28 + $0x328] sm:$0xff] }
 0x14c   : > { %2806 = vmatprep.subr.bf16.mxu0 %v4432_v55  ;;  %2929 = vmatprep.subr.bf16.mxu1 %v4434_v57  ;;  %v4480_v44 = vcombine.high %v586_v37, %v590_v38  ;;  %v4482_v45 = vcombine.high %v587_v39, %v591_v40  ;;  %v594_v46 = vld [vmem:[%s6090_s28 + $0x340] sm:$0xff]  ;;  %v595_v48 = vld [vmem:[%s6090_s28 + $0x348] sm:$0xff]  ;;  %v4479_v50 = vcombine.low %v586_v37, %v590_v38 }
 0x14d   : > { %v598_v47 = vld [vmem:[%s6090_s28 + $0x360] sm:$0xff]  ;;  %v599_v49 = vld [vmem:[%s6090_s28 + $0x368] sm:$0xff]  ;;  %v4481_v51 = vcombine.low %v587_v39, %v591_v40 }
 0x14e   : > { %v4488_v52 = vcombine.high %v594_v46, %v598_v47  ;;  %v4490_v53 = vcombine.high %v595_v48, %v599_v49  ;;  %v602_v54 = vld [vmem:[%s6090_s28 + $0x380] sm:$0xff]  ;;  %v603_v57 = vld [vmem:[%s6090_s28 + $0x388] sm:$0xff]  ;;  %v4487_v59 = vcombine.low %v594_v46, %v598_v47  ;;  %v4489_v60 = vcombine.low %v595_v48, %v599_v49 }
 0x14f   : > { %2807 = vmatpush1.bf16.msra.mxu0 %v4431_v63  ;;  %2930 = vmatpush1.bf16.msra.mxu1 %v4433_v1  ;;  %v606_v55 = vld [vmem:[%s6090_s28 + $0x3a0] sm:$0xff]  ;;  %v607_v58 = vld [vmem:[%s6090_s28 + $0x3a8] sm:$0xff] }
 0x150   : > { %2808 = vmatprep.subr.bf16.mxu0 %v4440_v2  ;;  %2931 = vmatprep.subr.bf16.mxu1 %v4442_v3  ;;  %v4496_v61 = vcombine.high %v602_v54, %v606_v55  ;;  %v4498_v62 = vcombine.high %v603_v57, %v607_v58  ;;  %v610_v63 = vld [vmem:[%s6090_s28 + $0x3c0] sm:$0xff]  ;;  %v611_v2 = vld [vmem:[%s6090_s28 + $0x3c8] sm:$0xff]  ;;  %v4495_v5 = vcombine.low %v602_v54, %v606_v55 }
 0x151   : > { %v614_v1 = vld [vmem:[%s6090_s28 + $0x3e0] sm:$0xff]  ;;  %v615_v3 = vld [vmem:[%s6090_s28 + $0x3e8] sm:$0xff]  ;;  %v4497_v6 = vcombine.low %v603_v57, %v607_v58 }
 0x152   : > { %v4504_v7 = vcombine.high %v610_v63, %v614_v1  ;;  %v619_v12 = vld [vmem:[%s6090_s28 + $0x408] sm:$0xff]  ;;  %v4503_v15 = vcombine.low %v610_v63, %v614_v1  ;;  %v630_v20 = vld [vmem:[%s6090_s28 + $0x460] sm:$0xff] }
 0x153   : > { %2809 = vmatpush1.bf16.msra.mxu0 %v4439_v8  ;;  %2932 = vmatpush1.bf16.msra.mxu1 %v4441_v9  ;;  %v4506_v8 = vcombine.high %v611_v2, %v615_v3  ;;  %v618_v9 = vld [vmem:[%s6090_s28 + $0x400] sm:$0xff]  ;;  %v623_v13 = vld [vmem:[%s6090_s28 + $0x428] sm:$0xff] }
 0x154   : > { %2810 = vmatprep.subr.bf16.mxu0 %v4448_v10  ;;  %2933 = vmatprep.subr.bf16.mxu1 %v4450_v11  ;;  %v622_v10 = vld [vmem:[%s6090_s28 + $0x420] sm:$0xff]  ;;  %v468_v11 = vsub.s32 3, %v6135_v41  ;;  %v627_v23 = vld [vmem:[%s6090_s28 + $0x448] sm:$0xff] }
 0x155   : > { %v634_v28 = vld [vmem:[%s6090_s28 + $0x480] sm:$0xff]  ;;  %v635_v30 = vld [vmem:[%s6090_s28 + $0x488] sm:$0xff] }
 0x156   : > { %v469_v21 = vrot.slane %v6145_v56, %v468_v11  ;;  %v638_v29 = vld [vmem:[%s6090_s28 + $0x4a0] sm:$0xff]  ;;  %v643_v40 = vld [vmem:[%s6090_s28 + $0x4c8] sm:$0xff] }
 0x157   : > { %2811 = vmatpush1.bf16.msra.mxu0 %v4447_v16  ;;  %2934 = vmatpush1.bf16.msra.mxu1 %v4449_v17  ;;  %v4505_v16 = vcombine.low %v611_v2, %v615_v3  ;;  %v4512_v17 = vcombine.high %v618_v9, %v622_v10  ;;  %v4528_v37 = vcombine.high %v634_v28, %v638_v29  ;;  %v642_v38 = vld [vmem:[%s6090_s28 + $0x4c0] sm:$0xff]  ;;  %v651_v49 = vld [vmem:[%s6090_s28 + $0x508] sm:$0xff] }
 0x158   : > { %2812 = vmatprep.subr.bf16.mxu0 %v4456_v18  ;;  %2935 = vmatprep.subr.bf16.mxu1 %v4458_v19  ;;  %v4514_v18 = vcombine.high %v619_v12, %v623_v13  ;;  %v626_v19 = vld [vmem:[%s6090_s28 + $0x440] sm:$0xff]  ;;  %v659_v58 = vld [vmem:[%s6090_s28 + $0x548] sm:$0xff] }
 0x159   : > { %v646_v39 = vld [vmem:[%s6090_s28 + $0x4e0] sm:$0xff]  ;;  %v667_v3 = vld [vmem:[%s6090_s28 + $0x588] sm:$0xff] }
 0x15a   : > { %v4536_v46 = vcombine.high %v642_v38, %v646_v39  ;;  %v650_v47 = vld [vmem:[%s6090_s28 + $0x500] sm:$0xff]  ;;  %v675_v11 = vld [vmem:[%s6090_s28 + $0x5c8] sm:$0xff] }
 0x15b   : > { %2813 = vmatpush1.bf16.msra.mxu0 %v4455_v24  ;;  %2936 = vmatpush1.bf16.msra.mxu1 %v4457_v25  ;;  %v631_v24 = vld [vmem:[%s6090_s28 + $0x468] sm:$0xff]  ;;  %v4511_v25 = vcombine.low %v618_v9, %v622_v10  ;;  %v654_v48 = vld [vmem:[%s6090_s28 + $0x520] sm:$0xff] }
 0x15c   : > { %2814 = vmatprep.subr.bf16.mxu0 %v4464_v26  ;;  %2937 = vmatprep.subr.bf16.mxu1 %v4466_v27  ;;  %v4513_v26 = vcombine.low %v619_v12, %v623_v13  ;;  %v4520_v27 = vcombine.high %v626_v19, %v630_v20  ;;  %v4522_v31 = vcombine.high %v627_v23, %v631_v24  ;;  %v658_v55 = vld [vmem:[%s6090_s28 + $0x540] sm:$0xff]  ;;  %v679_v13 = vld [vmem:[%s6090_s28 + $0x5e8] sm:$0xff] }
 0x15d   : > { %v4544_v54 = vcombine.high %v650_v47, %v654_v48  ;;  %v662_v57 = vld [vmem:[%s6090_s28 + $0x560] sm:$0xff] }
 0x15e   : > { %v4552_v63 = vcombine.high %v658_v55, %v662_v57  ;;  %v666_v1 = vld [vmem:[%s6090_s28 + $0x580] sm:$0xff] }
 0x15f   : > { %2815 = vmatpush1.bf16.msra.mxu0 %v4463_v33  ;;  %2938 = vmatpush1.bf16.msra.mxu1 %v4465_v34  ;;  %v639_v33 = vld [vmem:[%s6090_s28 + $0x4a8] sm:$0xff]  ;;  %v6206_v34 = vpack.c.bf16 %v469_v21, %v469_v21  ;;  %v670_v2 = vld [vmem:[%s6090_s28 + $0x5a0] sm:$0xff] }
 0x160   : > { %2816 = vmatprep.subr.bf16.mxu0 %v4472_v35  ;;  %2939 = vmatprep.subr.bf16.mxu1 %v4474_v36  ;;  %v4519_v35 = vcombine.low %v626_v19, %v630_v20  ;;  %v4521_v36 = vcombine.low %v627_v23, %v631_v24  ;;  %v674_v9 = vld [vmem:[%s6090_s28 + $0x5c0] sm:$0xff]  ;;  %v4559_v14 = vcombine.low %v666_v1, %v670_v2  ;;  %v683_v19 = vld [vmem:[%s6090_s28 + $0x608] sm:$0xff] }
 0x161   : > { %v678_v10 = vld [vmem:[%s6090_s28 + $0x5e0] sm:$0xff]  ;;  %v4570_v20 = vcombine.high %v675_v11, %v679_v13  ;;  %v687_v21 = vld [vmem:[%s6090_s28 + $0x628] sm:$0xff]  ;;  %v4569_v24 = vcombine.low %v675_v11, %v679_v13 }
 0x162   : > { %v4567_v23 = vcombine.low %v674_v9, %v678_v10  ;;  %v735_v11 = vld [vmem:[%s6090_s28 + $0x7a8] sm:$0xff] }
 0x163   : > { %2817 = vmatpush1.bf16.msra.mxu0 %v4471_v42  ;;  %2940 = vmatpush1.bf16.msra.mxu1 %v4473_v43  ;;  %v4530_v42 = vcombine.high %v635_v30, %v639_v33  ;;  %v647_v43 = vld [vmem:[%s6090_s28 + $0x4e8] sm:$0xff] }
 0x164   : > { %2818 = vmatprep.subr.bf16.mxu0 %v4480_v44  ;;  %2941 = vmatprep.subr.bf16.mxu1 %v4482_v45  ;;  %v4527_v44 = vcombine.low %v634_v28, %v638_v29  ;;  %v4529_v45 = vcombine.low %v635_v30, %v639_v33  ;;  %v691_v28 = vld [vmem:[%s6090_s28 + $0x648] sm:$0xff]  ;;  %v4578_v29 = vcombine.high %v683_v19, %v687_v21 }
 0x165   : > { %v695_v30 = vld [vmem:[%s6090_s28 + $0x668] sm:$0xff]  ;;  %v4577_v33 = vcombine.low %v683_v19, %v687_v21 }
 0x166   : > { %v743_v19 = vld [vmem:[%s6090_s28 + $0x7e8] sm:$0xff] }
 0x167   : > { %2819 = vmatpush1.bf16.msra.mxu0 %v4479_v50  ;;  %2942 = vmatpush1.bf16.msra.mxu1 %v4481_v51  ;;  %v4538_v50 = vcombine.high %v643_v40, %v647_v43  ;;  %v655_v51 = vld [vmem:[%s6090_s28 + $0x528] sm:$0xff] }
 0x168   : > { %2820 = vmatprep.subr.bf16.mxu0 %v4488_v52  ;;  %2943 = vmatprep.subr.bf16.mxu1 %v4490_v53  ;;  %v4535_v52 = vcombine.low %v642_v38, %v646_v39  ;;  %v4537_v53 = vcombine.low %v643_v40, %v647_v43  ;;  %v699_v38 = vld [vmem:[%s6090_s28 + $0x688] sm:$0xff]  ;;  %v4586_v39 = vcombine.high %v691_v28, %v695_v30 }
 0x169   : > { %v703_v40 = vld [vmem:[%s6090_s28 + $0x6a8] sm:$0xff]  ;;  %v4585_v43 = vcombine.low %v691_v28, %v695_v30  ;;  %v476_v30 = vsub.s32 5, %v6135_v41 }
 0x16b   : > { %2821 = vmatpush1.bf16.msra.mxu0 %v4487_v59  ;;  %2944 = vmatpush1.bf16.msra.mxu1 %v4489_v60  ;;  %v4546_v59 = vcombine.high %v651_v49, %v655_v51  ;;  %v663_v60 = vld [vmem:[%s6090_s28 + $0x568] sm:$0xff] }
 0x16c   : > { %2822 = vmatprep.subr.bf16.mxu0 %v4496_v61  ;;  %2945 = vmatprep.subr.bf16.mxu1 %v4498_v62  ;;  %v4543_v61 = vcombine.low %v650_v47, %v654_v48  ;;  %v4545_v62 = vcombine.low %v651_v49, %v655_v51  ;;  %v4554_v4 = vcombine.high %v659_v58, %v663_v60  ;;  %v707_v47 = vld [vmem:[%s6090_s28 + $0x6c8] sm:$0xff] }
 0x16d   : > { %v4594_v48 = vcombine.high %v699_v38, %v703_v40  ;;  %v711_v49 = vld [vmem:[%s6090_s28 + $0x6e8] sm:$0xff]  ;;  %v4593_v51 = vcombine.low %v699_v38, %v703_v40  ;;  %v758_v38 = vld [vmem:[%s6090_s28 + $0x860] sm:$0xff] }
 0x16f   : > { %2823 = vmatpush1.bf16.msra.mxu0 %v4495_v5  ;;  %2946 = vmatpush1.bf16.msra.mxu1 %v4497_v6  ;;  %v671_v5 = vld [vmem:[%s6090_s28 + $0x5a8] sm:$0xff]  ;;  %v4551_v6 = vcombine.low %v658_v55, %v662_v57  ;;  %v4602_v57 = vcombine.high %v707_v47, %v711_v49 }
 0x170   : > { %2824 = vmatprep.subr.bf16.mxu0 %v4504_v7  ;;  %2947 = vmatprep.subr.bf16.mxu1 %v4506_v8  ;;  %v4553_v7 = vcombine.low %v659_v58, %v663_v60  ;;  %v4560_v8 = vcombine.high %v666_v1, %v670_v2  ;;  %v4562_v12 = vcombine.high %v667_v3, %v671_v5  ;;  %v715_v55 = vld [vmem:[%s6090_s28 + $0x708] sm:$0xff] }
 0x171   : > { %v719_v58 = vld [vmem:[%s6090_s28 + $0x728] sm:$0xff]  ;;  %v4601_v60 = vcombine.low %v707_v47, %v711_v49  ;;  %v766_v49 = vld [vmem:[%s6090_s28 + $0x8a0] sm:$0xff] }
 0x172   : > { %v723_v1 = vld [vmem:[%s6090_s28 + $0x748] sm:$0xff]  ;;  %v4610_v2 = vcombine.high %v715_v55, %v719_v58 }
 0x173   : > { %2825 = vmatpush1.bf16.msra.mxu0 %v4503_v15  ;;  %2948 = vmatpush1.bf16.msra.mxu1 %v4505_v16  ;;  %v4561_v15 = vcombine.low %v667_v3, %v671_v5  ;;  %v4568_v16 = vcombine.high %v674_v9, %v678_v10  ;;  %v727_v3 = vld [vmem:[%s6090_s28 + $0x768] sm:$0xff]  ;;  %v4609_v5 = vcombine.low %v715_v55, %v719_v58  ;;  %v774_v58 = vld [vmem:[%s6090_s28 + $0x8e0] sm:$0xff] }
 0x174   : > { %2835 = vmatprep.subr.bf16.mxu0 %v4512_v17  ;;  %2958 = vmatprep.subr.bf16.mxu1 %v4514_v18  ;;  %v682_v17 = vld [vmem:[%s6090_s28 + $0x600] sm:$0xff]  ;;  %v731_v9 = vld [vmem:[%s6090_s28 + $0x788] sm:$0xff]  ;;  %v4618_v10 = vcombine.high %v723_v1, %v727_v3  ;;  %v4617_v13 = vcombine.low %v723_v1, %v727_v3 }
 0x175   : > { %v686_v18 = vld [vmem:[%s6090_s28 + $0x620] sm:$0xff] }
 0x176   : > { %2827 = vmatmul.mubr.bf16.vlgmr.msra.gmra.mrb[0].mxu0 %v6198_v22  ;;  %2950 = vmatmul.mubr.bf16.vlgmr.msra.gmra.mrb[0].mxu1 %v6198_v22  ;;  %v782_v3 = vld [vmem:[%s6090_s28 + $0x920] sm:$0xff] }
 0x177   : > { %2836 = vmatpush1.bf16.msra.mxu0 %v4511_v25  ;;  %2959 = vmatpush1.bf16.msra.mxu1 %v4513_v26  ;;  %v4576_v25 = vcombine.high %v682_v17, %v686_v18  ;;  %v690_v26 = vld [vmem:[%s6090_s28 + $0x640] sm:$0xff] }
 0x178   : > { %2837 = vmatprep.subr.bf16.mxu0 %v4520_v27  ;;  %2960 = vmatprep.subr.bf16.mxu1 %v4522_v31  ;;  %v694_v27 = vld [vmem:[%s6090_s28 + $0x660] sm:$0xff]  ;;  %v4575_v31 = vcombine.low %v682_v17, %v686_v18  ;;  %v739_v17 = vld [vmem:[%s6090_s28 + $0x7c8] sm:$0xff]  ;;  %v4626_v18 = vcombine.high %v731_v9, %v735_v11 }
 0x179   : > { %2867 = vmatprep.mubr.bf16.mxu0 %v6206_v34  ;;  %2990 = vmatprep.mubr.bf16.mxu1 %v6206_v34  ;;  %v4634_v28 = vcombine.high %v739_v17, %v743_v19 }
 0x17b   : > { %2838 = vmatpush1.bf16.msra.mxu0 %v4519_v35  ;;  %2961 = vmatpush1.bf16.msra.mxu1 %v4521_v36  ;;  %v4584_v35 = vcombine.high %v690_v26, %v694_v27  ;;  %v698_v36 = vld [vmem:[%s6090_s28 + $0x680] sm:$0xff] }
 0x17c   : > { %2839 = vmatprep.subr.bf16.mxu0 %v4528_v37  ;;  %2962 = vmatprep.subr.bf16.mxu1 %v4530_v42  ;;  %v702_v37 = vld [vmem:[%s6090_s28 + $0x6a0] sm:$0xff]  ;;  %v4583_v42 = vcombine.low %v690_v26, %v694_v27  ;;  %v747_v27 = vld [vmem:[%s6090_s28 + $0x808] sm:$0xff] }
 0x17d   : > { %v750_v26 = vld [vmem:[%s6090_s28 + $0x820] sm:$0xff] }
 0x17f   : > { %2840 = vmatpush1.bf16.msra.mxu0 %v4527_v44  ;;  %2963 = vmatpush1.bf16.msra.mxu1 %v4529_v45  ;;  %v4592_v44 = vcombine.high %v698_v36, %v702_v37  ;;  %v706_v45 = vld [vmem:[%s6090_s28 + $0x6c0] sm:$0xff] }
 0x180   : > { %2841 = vmatprep.subr.bf16.mxu0 %v4536_v46  ;;  %2964 = vmatprep.subr.bf16.mxu1 %v4538_v50  ;;  %v710_v46 = vld [vmem:[%s6090_s28 + $0x6e0] sm:$0xff]  ;;  %v4591_v50 = vcombine.low %v698_v36, %v702_v37 }
 0x181   : > { %v754_v37 = vld [vmem:[%s6090_s28 + $0x840] sm:$0xff] }
 0x182   : > { %v4648_v47 = vcombine.high %v754_v37, %v758_v38 }
 0x183   : > { %2842 = vmatpush1.bf16.msra.mxu0 %v4535_v52  ;;  %2965 = vmatpush1.bf16.msra.mxu1 %v4537_v53  ;;  %v4600_v52 = vcombine.high %v706_v45, %v710_v46  ;;  %v714_v53 = vld [vmem:[%s6090_s28 + $0x700] sm:$0xff] }
 0x184   : > { %2843 = vmatprep.subr.bf16.mxu0 %v4544_v54  ;;  %2966 = vmatprep.subr.bf16.mxu1 %v4546_v59  ;;  %v718_v54 = vld [vmem:[%s6090_s28 + $0x720] sm:$0xff]  ;;  %v4599_v59 = vcombine.low %v706_v45, %v710_v46 }
 0x187   : > { %2844 = vmatpush1.bf16.msra.mxu0 %v4543_v61  ;;  %2967 = vmatpush1.bf16.msra.mxu1 %v4545_v62  ;;  %v4608_v61 = vcombine.high %v714_v53, %v718_v54  ;;  %v722_v62 = vld [vmem:[%s6090_s28 + $0x740] sm:$0xff] }
 0x188   : > { %2845 = vmatprep.subr.bf16.mxu0 %v4552_v63  ;;  %2968 = vmatprep.subr.bf16.mxu1 %v4554_v4  ;;  %v726_v63 = vld [vmem:[%s6090_s28 + $0x760] sm:$0xff]  ;;  %v4607_v4 = vcombine.low %v714_v53, %v718_v54 }
 0x18b   : > { %2846 = vmatpush1.bf16.msra.mxu0 %v4551_v6  ;;  %2969 = vmatpush1.bf16.msra.mxu1 %v4553_v7  ;;  %v4616_v6 = vcombine.high %v722_v62, %v726_v63  ;;  %v730_v7 = vld [vmem:[%s6090_s28 + $0x780] sm:$0xff] }
 0x18c   : > { %2847 = vmatprep.subr.bf16.mxu0 %v4560_v8  ;;  %2970 = vmatprep.subr.bf16.mxu1 %v4562_v12  ;;  %v734_v8 = vld [vmem:[%s6090_s28 + $0x7a0] sm:$0xff]  ;;  %v4615_v12 = vcombine.low %v722_v62, %v726_v63 }
 0x18d   : > { %v4623_v21 = vcombine.low %v730_v7, %v734_v8 }
 0x18f   : > { %2848 = vmatpush1.bf16.msra.mxu0 %v4559_v14  ;;  %2971 = vmatpush1.bf16.msra.mxu1 %v4561_v15  ;;  %v4624_v14 = vcombine.high %v730_v7, %v734_v8  ;;  %v738_v15 = vld [vmem:[%s6090_s28 + $0x7c0] sm:$0xff] }
 0x190   : > { %2849 = vmatprep.subr.bf16.mxu0 %v4568_v16  ;;  %2972 = vmatprep.subr.bf16.mxu1 %v4570_v20  ;;  %v742_v16 = vld [vmem:[%s6090_s28 + $0x7e0] sm:$0xff]  ;;  %v464_v20 = vsub.s32 2, %v6135_v41 }
 0x193   : > { %2850 = vmatpush1.bf16.msra.mxu0 %v4567_v23  ;;  %2973 = vmatpush1.bf16.msra.mxu1 %v4569_v24  ;;  %v4625_v23 = vcombine.low %v731_v9, %v735_v11  ;;  %v4632_v24 = vcombine.high %v738_v15, %v742_v16  ;;  %v790_v11 = vld [vmem:[%s6090_s28 + $0x960] sm:$0xff] }
 0x194   : > { %2851 = vmatprep.subr.bf16.mxu0 %v4576_v25  ;;  %2974 = vmatprep.subr.bf16.mxu1 %v4578_v29  ;;  %v746_v25 = vld [vmem:[%s6090_s28 + $0x800] sm:$0xff]  ;;  %v751_v29 = vld [vmem:[%s6090_s28 + $0x828] sm:$0xff] }
 0x195   : > { %v4640_v36 = vcombine.high %v746_v25, %v750_v26  ;;  %v4642_v40 = vcombine.high %v747_v27, %v751_v29  ;;  %v4639_v45 = vcombine.low %v746_v25, %v750_v26  ;;  %v4641_v46 = vcombine.low %v747_v27, %v751_v29  ;;  %v806_v29 = vld [vmem:[%s6090_s28 + $0x9e0] sm:$0xff] }
 0x197   : > { %2852 = vmatpush1.bf16.msra.mxu0 %v4575_v31  ;;  %2975 = vmatpush1.bf16.msra.mxu1 %v4577_v33  ;;  %v465_v31 = vrot.slane %v6145_v56, %v464_v20  ;;  %v4631_v33 = vcombine.low %v738_v15, %v742_v16  ;;  %v798_v20 = vld [vmem:[%s6090_s28 + $0x9a0] sm:$0xff] }
 0x198   : > { %2853 = vmatprep.subr.bf16.mxu0 %v4584_v35  ;;  %2976 = vmatprep.subr.bf16.mxu1 %v4586_v39  ;;  %v4633_v35 = vcombine.low %v739_v17, %v743_v19  ;;  %v755_v39 = vld [vmem:[%s6090_s28 + $0x848] sm:$0xff]  ;;  %v794_v19 = vld [vmem:[%s6090_s28 + $0x980] sm:$0xff] }
 0x199   : > { %v4688_v26 = vcombine.high %v794_v19, %v798_v20 }
 0x19b   : > { %2854 = vmatpush1.bf16.msra.mxu0 %v4583_v42  ;;  %2977 = vmatpush1.bf16.msra.mxu1 %v4585_v43  ;;  %v759_v42 = vld [vmem:[%s6090_s28 + $0x868] sm:$0xff]  ;;  %v477_v43 = vrot.slane %v6145_v56, %v476_v30  ;;  %v4647_v56 = vcombine.low %v754_v37, %v758_v38  ;;  %v810_v38 = vld [vmem:[%s6090_s28 + $0xa00] sm:$0xff] }
 0x19c   : > { %2855 = vmatprep.subr.bf16.mxu0 %v4592_v44  ;;  %2978 = vmatprep.subr.bf16.mxu1 %v4594_v48  ;;  %v6276_v44 = vpack.c.bf16 %v465_v31, %v465_v31  ;;  %v762_v48 = vld [vmem:[%s6090_s28 + $0x880] sm:$0xff]  ;;  %v4649_v54 = vcombine.low %v755_v39, %v759_v42  ;;  %v803_v30 = vld [vmem:[%s6090_s28 + $0x9c8] sm:$0xff] }
 0x19d   : > { %v6282_v53 = vpack.c.bf16 %v477_v43, %v477_v43  ;;  %v4656_v55 = vcombine.high %v762_v48, %v766_v49  ;;  %v4655_v62 = vcombine.low %v762_v48, %v766_v49  ;;  %v807_v31 = vld [vmem:[%s6090_s28 + $0x9e8] sm:$0xff]  ;;  %v818_v48 = vld [vmem:[%s6090_s28 + $0xa40] sm:$0xff] }
 0x19e   : > { %v4698_v37 = vcombine.high %v803_v30, %v807_v31  ;;  %v822_v49 = vld [vmem:[%s6090_s28 + $0xa60] sm:$0xff] }
 0x19f   : > { %2856 = vmatpush1.bf16.msra.mxu0 %v4591_v50  ;;  %2979 = vmatpush1.bf16.msra.mxu1 %v4593_v51  ;;  %v763_v50 = vld [vmem:[%s6090_s28 + $0x888] sm:$0xff]  ;;  %v4650_v51 = vcombine.high %v755_v39, %v759_v42  ;;  %v814_v39 = vld [vmem:[%s6090_s28 + $0xa20] sm:$0xff] }
 0x1a0   : > { %2857 = vmatprep.subr.bf16.mxu0 %v4600_v52  ;;  %2980 = vmatprep.subr.bf16.mxu1 %v4602_v57  ;;  %v767_v52 = vld [vmem:[%s6090_s28 + $0x8a8] sm:$0xff]  ;;  %v770_v57 = vld [vmem:[%s6090_s28 + $0x8c0] sm:$0xff] }
 0x1a1   : > { %v4657_v63 = vcombine.low %v763_v50, %v767_v52  ;;  %v4664_v1 = vcombine.high %v770_v57, %v774_v58  ;;  %v4663_v7 = vcombine.low %v770_v57, %v774_v58  ;;  %v815_v42 = vld [vmem:[%s6090_s28 + $0xa28] sm:$0xff]  ;;  %v826_v57 = vld [vmem:[%s6090_s28 + $0xa80] sm:$0xff] }
 0x1a2   : > { %v830_v58 = vld [vmem:[%s6090_s28 + $0xaa0] sm:$0xff] }
 0x1a3   : > { %2858 = vmatpush1.bf16.msra.mxu0 %v4599_v59  ;;  %2981 = vmatpush1.bf16.msra.mxu1 %v4601_v60  ;;  %v771_v59 = vld [vmem:[%s6090_s28 + $0x8c8] sm:$0xff]  ;;  %v4658_v60 = vcombine.high %v763_v50, %v767_v52  ;;  %v4703_v52 = vcombine.low %v810_v38, %v814_v39 }
 0x1a4   : > { %2859 = vmatprep.subr.bf16.mxu0 %v4608_v61  ;;  %2982 = vmatprep.subr.bf16.mxu1 %v4610_v2  ;;  %v775_v61 = vld [vmem:[%s6090_s28 + $0x8e8] sm:$0xff]  ;;  %v778_v2 = vld [vmem:[%s6090_s28 + $0x900] sm:$0xff] }
 0x1a5   : > { %v4665_v8 = vcombine.low %v771_v59, %v775_v61  ;;  %v4672_v9 = vcombine.high %v778_v2, %v782_v3  ;;  %v4671_v15 = vcombine.low %v778_v2, %v782_v3  ;;  %v819_v50 = vld [vmem:[%s6090_s28 + $0xa48] sm:$0xff]  ;;  %v834_v2 = vld [vmem:[%s6090_s28 + $0xac0] sm:$0xff] }
 0x1a6   : > { %v838_v3 = vld [vmem:[%s6090_s28 + $0xae0] sm:$0xff] }
 0x1a7   : > { %2860 = vmatpush1.bf16.msra.mxu0 %v4607_v4  ;;  %2983 = vmatpush1.bf16.msra.mxu1 %v4609_v5  ;;  %v779_v4 = vld [vmem:[%s6090_s28 + $0x908] sm:$0xff]  ;;  %v4666_v5 = vcombine.high %v771_v59, %v775_v61  ;;  %v4711_v61 = vcombine.low %v818_v48, %v822_v49 }
 0x1a8   : > { %2861 = vmatprep.subr.bf16.mxu0 %v4616_v6  ;;  %2984 = vmatprep.subr.bf16.mxu1 %v4618_v10  ;;  %v783_v6 = vld [vmem:[%s6090_s28 + $0x928] sm:$0xff]  ;;  %v786_v10 = vld [vmem:[%s6090_s28 + $0x940] sm:$0xff] }
 0x1a9   : > { %v4673_v16 = vcombine.low %v779_v4, %v783_v6  ;;  %v4680_v17 = vcombine.high %v786_v10, %v790_v11  ;;  %v827_v59 = vld [vmem:[%s6090_s28 + $0xa88] sm:$0xff] }
 0x1ab   : > { %2862 = vmatpush1.bf16.msra.mxu0 %v4615_v12  ;;  %2985 = vmatpush1.bf16.msra.mxu1 %v4617_v13  ;;  %v787_v12 = vld [vmem:[%s6090_s28 + $0x948] sm:$0xff]  ;;  %v4674_v13 = vcombine.high %v779_v4, %v783_v6  ;;  %v4719_v6 = vcombine.low %v826_v57, %v830_v58 }
 0x1ac   : > { %2863 = vmatprep.subr.bf16.mxu0 %v4624_v14  ;;  %2986 = vmatprep.subr.bf16.mxu1 %v4626_v18  ;;  %v791_v14 = vld [vmem:[%s6090_s28 + $0x968] sm:$0xff] }
 0x1ad   : > { %v4682_v18 = vcombine.high %v787_v12, %v791_v14  ;;  %v4681_v25 = vcombine.low %v787_v12, %v791_v14  ;;  %v835_v4 = vld [vmem:[%s6090_s28 + $0xac8] sm:$0xff]  ;;  %v4727_v14 = vcombine.low %v834_v2, %v838_v3 }
 0x1ae   : > { %v843_v12 = vld [vmem:[%s6090_s28 + $0xb08] sm:$0xff] }
 0x1af   : > { %2864 = vmatpush1.bf16.msra.mxu0 %v4623_v21  ;;  %2987 = vmatpush1.bf16.msra.mxu1 %v4625_v23  ;;  %v795_v21 = vld [vmem:[%s6090_s28 + $0x988] sm:$0xff] }
 0x1b0   : > { %2865 = vmatprep.subr.bf16.mxu0 %v4632_v24  ;;  %2988 = vmatprep.subr.bf16.mxu1 %v4634_v28  ;;  %v799_v23 = vld [vmem:[%s6090_s28 + $0x9a8] sm:$0xff]  ;;  %v4679_v24 = vcombine.low %v786_v10, %v790_v11  ;;  %v802_v28 = vld [vmem:[%s6090_s28 + $0x9c0] sm:$0xff] }
 0x1b1   : > { %v4690_v27 = vcombine.high %v795_v21, %v799_v23  ;;  %v4695_v43 = vcombine.low %v802_v28, %v806_v29  ;;  %v842_v10 = vld [vmem:[%s6090_s28 + $0xb00] sm:$0xff] }
 0x1b2   : > { %v846_v11 = vld [vmem:[%s6090_s28 + $0xb20] sm:$0xff] }
 0x1b3   : > { %2866 = vmatpush1.bf16.msra.mxu0 %v4631_v33  ;;  %2989 = vmatpush1.bf16.msra.mxu1 %v4633_v35  ;;  %v4687_v33 = vcombine.low %v794_v19, %v798_v20  ;;  %v4689_v35 = vcombine.low %v795_v21, %v799_v23  ;;  %v854_v19 = vld [vmem:[%s6090_s28 + $0xb60] sm:$0xff]  ;;  %v851_v20 = vld [vmem:[%s6090_s28 + $0xb48] sm:$0xff]  ;;  %v4735_v23 = vcombine.low %v842_v10, %v846_v11 }
 0x1b4   : > { %2876 = vmatprep.subr.bf16.mxu0 %v4640_v36  ;;  %2999 = vmatprep.subr.bf16.mxu1 %v4642_v40  ;;  %v4696_v36 = vcombine.high %v802_v28, %v806_v29  ;;  %v811_v40 = vld [vmem:[%s6090_s28 + $0xa08] sm:$0xff]  ;;  %v862_v28 = vld [vmem:[%s6090_s28 + $0xba0] sm:$0xff] }
 0x1b5   : > { %v855_v21 = vld [vmem:[%s6090_s28 + $0xb68] sm:$0xff] }
 0x1b6   : > { %2868 = vmatmul.mubr.bf16.vlgmr.msra.gmra.mrb[0].mxu0 %v6276_v44  ;;  %2991 = vmatmul.mubr.bf16.vlgmr.msra.gmra.mrb[0].mxu1 %v6276_v44  ;;  %v859_v29 = vld [vmem:[%s6090_s28 + $0xb88] sm:$0xff] }
 0x1b7   : > { %2877 = vmatpush1.bf16.msra.mxu0 %v4639_v45  ;;  %3000 = vmatpush1.bf16.msra.mxu1 %v4641_v46  ;;  %v4697_v45 = vcombine.low %v803_v30, %v807_v31  ;;  %v4704_v46 = vcombine.high %v810_v38, %v814_v39  ;;  %v863_v30 = vld [vmem:[%s6090_s28 + $0xba8] sm:$0xff]  ;;  %v870_v38 = vld [vmem:[%s6090_s28 + $0xbe0] sm:$0xff] }
 0x1b8   : > { %2878 = vmatprep.subr.bf16.mxu0 %v4648_v47  ;;  %3001 = vmatprep.subr.bf16.mxu1 %v4650_v51  ;;  %v4706_v47 = vcombine.high %v811_v40, %v815_v42  ;;  %v823_v51 = vld [vmem:[%s6090_s28 + $0xa68] sm:$0xff] }
 0x1b9   : > { %2908 = vmatprep.mubr.bf16.mxu0 %v6282_v53  ;;  %3031 = vmatprep.mubr.bf16.mxu1 %v6282_v53  ;;  %v867_v39 = vld [vmem:[%s6090_s28 + $0xbc8] sm:$0xff] }
 0x1bb   : > { %2879 = vmatpush1.bf16.msra.mxu0 %v4647_v56  ;;  %3002 = vmatpush1.bf16.msra.mxu1 %v4649_v54  ;;  %v4705_v56 = vcombine.low %v811_v40, %v815_v42  ;;  %v4712_v54 = vcombine.high %v818_v48, %v822_v49  ;;  %v871_v40 = vld [vmem:[%s6090_s28 + $0xbe8] sm:$0xff]  ;;  %v472_v42 = vsub.s32 4, %v6135_v41  ;;  %v492_v48 = vld [vmem:[%s6090_s28 + $0x10] sm:$0xff] }
 0x1bc   : > { %2880 = vmatprep.subr.bf16.mxu0 %v4656_v55  ;;  %3003 = vmatprep.subr.bf16.mxu1 %v4658_v60  ;;  %v4714_v55 = vcombine.high %v819_v50, %v823_v51  ;;  %v831_v60 = vld [vmem:[%s6090_s28 + $0xaa8] sm:$0xff]  ;;  %v496_v49 = vld [vmem:[%s6090_s28 + $0x30] sm:$0xff] }
 0x1bf   : > { %2881 = vmatpush1.bf16.msra.mxu0 %v4655_v62  ;;  %3004 = vmatpush1.bf16.msra.mxu1 %v4657_v63  ;;  %v4713_v62 = vcombine.low %v819_v50, %v823_v51  ;;  %v4720_v63 = vcombine.high %v826_v57, %v830_v58  ;;  %v5281_v50 = vld [vmem:[%s6082_s4] sm:$0x3f]  ;;  %s5524_s4 = sshll.u32 %s5649_s27, 4  ;;  %s5525_s4 = int_to_ptr.vmem [resolvable:$false] %s5524_s4 }
 0x1c0   : > { %2882 = vmatprep.subr.bf16.mxu0 %v4664_v1  ;;  %3005 = vmatprep.subr.bf16.mxu1 %v4666_v5  ;;  %v4722_v1 = vcombine.high %v827_v59, %v831_v60  ;;  %v839_v5 = vld [vmem:[%s6090_s28 + $0xae8] sm:$0xff]  ;;  %v473_v51 = vrot.slane %v5281_v50, %v472_v42  ;;  %v500_v58 = vld [vmem:[%s6090_s28 + $0x50] sm:$0xff]  ;;  %v545_v42 = vld [vmem:[%s6090_s28 + $0x1b8] sm:$0xff]  ;;  %s5526_s1 = scalar_lea.vmem %s5525_s4, 32  ;;  %p5527_p12 = scmp.lt.s32.totalorder %s6576_s16, %s5525_s4 }
 0x1c1   : > { %v549_v50 = vld [vmem:[%s6090_s28 + $0x1d8] sm:$0xff]  ;;  %p5528_p3 = scmp.lt.s32.totalorder %s5526_s1, %s5520_s26 }
 0x1c3   : > { %2883 = vmatpush1.bf16.msra.mxu0 %v4663_v7  ;;  %3006 = vmatpush1.bf16.msra.mxu1 %v4665_v8  ;;  %v4721_v7 = vcombine.low %v827_v59, %v831_v60  ;;  %v4728_v8 = vcombine.high %v834_v2, %v838_v3  ;;  %v504_v59 = vld [vmem:[%s6090_s28 + $0x70] sm:$0xff]  ;;  %v6348_v60 = vpack.c.bf16 %v473_v51, %v473_v51  ;;  %v553_v51 = vld [vmem:[%s6090_s28 + $0x1f8] sm:$0xff]  ;;  %p5529_p2 = por %p5528_p3, %p5527_p12 }
 0x1c4   : > { %2884 = vmatprep.subr.bf16.mxu0 %v4672_v9  ;;  %3007 = vmatprep.subr.bf16.mxu1 %v4674_v13  ;;  %v4730_v9 = vcombine.high %v835_v4, %v839_v5  ;;  %v847_v13 = vld [vmem:[%s6090_s28 + $0xb28] sm:$0xff]  ;;  %v4396_v2 = vcombine.high %v500_v58, %v504_v59 }
 0x1c5   : > { %p5530_p13 = pnand %p5529_p2, %p5523_p10 }
 0x1c7   : > { %2885 = vmatpush1.bf16.msra.mxu0 %v4671_v15  ;;  %3008 = vmatpush1.bf16.msra.mxu1 %v4673_v16  ;;  %v4729_v15 = vcombine.low %v835_v4, %v839_v5  ;;  %v4736_v16 = vcombine.high %v842_v10, %v846_v11  ;;  %v508_v4 = vld [vmem:[%s6090_s28 + $0x90] sm:$0xff] }
 0x1c8   : > { %2886 = vmatprep.subr.bf16.mxu0 %v4680_v17  ;;  %3009 = vmatprep.subr.bf16.mxu1 %v4682_v18  ;;  %v4738_v17 = vcombine.high %v843_v12, %v847_v13  ;;  %v850_v18 = vld [vmem:[%s6090_s28 + $0xb40] sm:$0xff]  ;;  %v512_v5 = vld [vmem:[%s6090_s28 + $0xb0] sm:$0xff] }
 0x1c9   : > { %v4743_v31 = vcombine.low %v850_v18, %v854_v19  ;;  %v4404_v10 = vcombine.high %v508_v4, %v512_v5 }
 0x1cb   : > { %2887 = vmatpush1.bf16.msra.mxu0 %v4679_v24  ;;  %3010 = vmatpush1.bf16.msra.mxu1 %v4681_v25  ;;  %v4737_v24 = vcombine.low %v843_v12, %v847_v13  ;;  %v4744_v25 = vcombine.high %v850_v18, %v854_v19  ;;  %v516_v12 = vld [vmem:[%s6090_s28 + $0xd0] sm:$0xff] }
 0x1cc   : > { %2888 = vmatprep.subr.bf16.mxu0 %v4688_v26  ;;  %3011 = vmatprep.subr.bf16.mxu1 %v4690_v27  ;;  %v4746_v26 = vcombine.high %v851_v20, %v855_v21  ;;  %v858_v27 = vld [vmem:[%s6090_s28 + $0xb80] sm:$0xff]  ;;  %v520_v13 = vld [vmem:[%s6090_s28 + $0xf0] sm:$0xff] }
 0x1cd   : > { %v4412_v18 = vcombine.high %v516_v12, %v520_v13 }
 0x1cf   : > { %2889 = vmatpush1.bf16.msra.mxu0 %v4687_v33  ;;  %3012 = vmatpush1.bf16.msra.mxu1 %v4689_v35  ;;  %v4745_v33 = vcombine.low %v851_v20, %v855_v21  ;;  %v4752_v35 = vcombine.high %v858_v27, %v862_v28  ;;  %v524_v20 = vld [vmem:[%s6090_s28 + $0x110] sm:$0xff] }
 0x1d0   : > { %2890 = vmatprep.subr.bf16.mxu0 %v4696_v36  ;;  %3013 = vmatprep.subr.bf16.mxu1 %v4698_v37  ;;  %v4754_v36 = vcombine.high %v859_v29, %v863_v30  ;;  %v866_v37 = vld [vmem:[%s6090_s28 + $0xbc0] sm:$0xff]  ;;  %v528_v21 = vld [vmem:[%s6090_s28 + $0x130] sm:$0xff] }
 0x1d1   : > { %v4759_v41 = vcombine.low %v866_v37, %v870_v38 }
 0x1d3   : > { %2891 = vmatpush1.bf16.msra.mxu0 %v4695_v43  ;;  %3014 = vmatpush1.bf16.msra.mxu1 %v4697_v45  ;;  %v4751_v43 = vcombine.low %v858_v27, %v862_v28  ;;  %v4753_v45 = vcombine.low %v859_v29, %v863_v30  ;;  %v532_v28 = vld [vmem:[%s6090_s28 + $0x150] sm:$0xff]  ;;  %v533_v30 = vld [vmem:[%s6090_s28 + $0x158] sm:$0xff] }
 0x1d4   : > { %2892 = vmatprep.subr.bf16.mxu0 %v4704_v46  ;;  %3015 = vmatprep.subr.bf16.mxu1 %v4706_v47  ;;  %v4760_v46 = vcombine.high %v866_v37, %v870_v38  ;;  %v4762_v47 = vcombine.high %v867_v39, %v871_v40  ;;  %v536_v29 = vld [vmem:[%s6090_s28 + $0x170] sm:$0xff] }
 0x1d5   : > { %v540_v38 = vld [vmem:[%s6090_s28 + $0x190] sm:$0xff] }
 0x1d7   : > { %2893 = vmatpush1.bf16.msra.mxu0 %v4703_v52  ;;  %3016 = vmatpush1.bf16.msra.mxu1 %v4705_v56  ;;  %v493_v52 = vld [vmem:[%s6090_s28 + $0x18] sm:$0xff] }
 0x1d8   : > { %2894 = vmatprep.subr.bf16.mxu0 %v4712_v54  ;;  %3017 = vmatprep.subr.bf16.mxu1 %v4714_v55  ;;  %v497_v56 = vld [vmem:[%s6090_s28 + $0x38] sm:$0xff]  ;;  %v4761_v54 = vcombine.low %v867_v39, %v871_v40  ;;  %v4388_v55 = vcombine.high %v492_v48, %v496_v49  ;;  %v544_v39 = vld [vmem:[%s6090_s28 + $0x1b0] sm:$0xff] }
 0x1d9   : > { %v4390_v57 = vcombine.high %v493_v52, %v497_v56  ;;  %v541_v40 = vld [vmem:[%s6090_s28 + $0x198] sm:$0xff] }
 0x1db   : > { %2895 = vmatpush1.bf16.msra.mxu0 %v4711_v61  ;;  %3018 = vmatpush1.bf16.msra.mxu1 %v4713_v62  ;;  %v501_v61 = vld [vmem:[%s6090_s28 + $0x58] sm:$0xff] }
 0x1dc   : > { %2896 = vmatprep.subr.bf16.mxu0 %v4720_v63  ;;  %3019 = vmatprep.subr.bf16.mxu1 %v4722_v1  ;;  %v505_v62 = vld [vmem:[%s6090_s28 + $0x78] sm:$0xff]  ;;  %v4387_v63 = vcombine.low %v492_v48, %v496_v49  ;;  %v4389_v1 = vcombine.low %v493_v52, %v497_v56  ;;  %v548_v48 = vld [vmem:[%s6090_s28 + $0x1d0] sm:$0xff]  ;;  %v4435_v52 = vcombine.low %v540_v38, %v544_v39 }
 0x1dd   : > { %v4398_v3 = vcombine.high %v501_v61, %v505_v62  ;;  %v552_v49 = vld [vmem:[%s6090_s28 + $0x1f0] sm:$0xff]  ;;  %v4437_v56 = vcombine.low %v541_v40, %v545_v42 }
 0x1df   : > { %2897 = vmatpush1.bf16.msra.mxu0 %v4719_v6  ;;  %3020 = vmatpush1.bf16.msra.mxu1 %v4721_v7  ;;  %v509_v6 = vld [vmem:[%s6090_s28 + $0x98] sm:$0xff] }
 0x1e0   : > { %2898 = vmatprep.subr.bf16.mxu0 %v4728_v8  ;;  %3021 = vmatprep.subr.bf16.mxu1 %v4730_v9  ;;  %v513_v7 = vld [vmem:[%s6090_s28 + $0xb8] sm:$0xff]  ;;  %v4395_v8 = vcombine.low %v500_v58, %v504_v59  ;;  %v4397_v9 = vcombine.low %v501_v61, %v505_v62  ;;  %v4443_v61 = vcombine.low %v548_v48, %v552_v49 }
 0x1e1   : > { %v4406_v11 = vcombine.high %v509_v6, %v513_v7  ;;  %v557_v58 = vld [vmem:[%s6090_s28 + $0x218] sm:$0xff]  ;;  %v4445_v62 = vcombine.low %v549_v50, %v553_v51 }
 0x1e2   : > { %v561_v59 = vld [vmem:[%s6090_s28 + $0x238] sm:$0xff] }
 0x1e3   : > { %2899 = vmatpush1.bf16.msra.mxu0 %v4727_v14  ;;  %3022 = vmatpush1.bf16.msra.mxu1 %v4729_v15  ;;  %v517_v14 = vld [vmem:[%s6090_s28 + $0xd8] sm:$0xff] }
 0x1e4   : > { %2900 = vmatprep.subr.bf16.mxu0 %v4736_v16  ;;  %3023 = vmatprep.subr.bf16.mxu1 %v4738_v17  ;;  %v521_v15 = vld [vmem:[%s6090_s28 + $0xf8] sm:$0xff]  ;;  %v4403_v16 = vcombine.low %v508_v4, %v512_v5  ;;  %v4405_v17 = vcombine.low %v509_v6, %v513_v7  ;;  %v4453_v7 = vcombine.low %v557_v58, %v561_v59 }
 0x1e5   : > { %v4414_v19 = vcombine.high %v517_v14, %v521_v15  ;;  %v565_v4 = vld [vmem:[%s6090_s28 + $0x258] sm:$0xff] }
 0x1e6   : > { %v569_v5 = vld [vmem:[%s6090_s28 + $0x278] sm:$0xff] }
 0x1e7   : > { %2901 = vmatpush1.bf16.msra.mxu0 %v4735_v23  ;;  %3024 = vmatpush1.bf16.msra.mxu1 %v4737_v24  ;;  %v525_v23 = vld [vmem:[%s6090_s28 + $0x118] sm:$0xff] }
 0x1e8   : > { %2902 = vmatprep.subr.bf16.mxu0 %v4744_v25  ;;  %3025 = vmatprep.subr.bf16.mxu1 %v4746_v26  ;;  %v529_v24 = vld [vmem:[%s6090_s28 + $0x138] sm:$0xff]  ;;  %v4411_v25 = vcombine.low %v516_v12, %v520_v13  ;;  %v4420_v26 = vcombine.high %v524_v20, %v528_v21 }
 0x1e9   : > { %v4422_v27 = vcombine.high %v525_v23, %v529_v24  ;;  %v573_v12 = vld [vmem:[%s6090_s28 + $0x298] sm:$0xff] }
 0x1ea   : > { %v577_v13 = vld [vmem:[%s6090_s28 + $0x2b8] sm:$0xff] }
 0x1eb   : > { %2903 = vmatpush1.bf16.msra.mxu0 %v4743_v31  ;;  %3026 = vmatpush1.bf16.msra.mxu1 %v4745_v33  ;;  %v537_v31 = vld [vmem:[%s6090_s28 + $0x178] sm:$0xff]  ;;  %v4419_v33 = vcombine.low %v524_v20, %v528_v21 }
 0x1ec   : > { %2904 = vmatprep.subr.bf16.mxu0 %v4752_v35  ;;  %3027 = vmatprep.subr.bf16.mxu1 %v4754_v36  ;;  %v4421_v35 = vcombine.low %v525_v23, %v529_v24  ;;  %v4428_v36 = vcombine.high %v532_v28, %v536_v29  ;;  %v4430_v37 = vcombine.high %v533_v30, %v537_v31  ;;  %v581_v20 = vld [vmem:[%s6090_s28 + $0x2d8] sm:$0xff] }
 0x1ed   : > { %v585_v21 = vld [vmem:[%s6090_s28 + $0x2f8] sm:$0xff]  ;;  %v4469_v24 = vcombine.low %v573_v12, %v577_v13 }
 0x1ef   : > { %2905 = vmatpush1.bf16.msra.mxu0 %v4751_v43  ;;  %3028 = vmatpush1.bf16.msra.mxu1 %v4753_v45  ;;  %v4427_v43 = vcombine.low %v532_v28, %v536_v29  ;;  %v4429_v45 = vcombine.low %v533_v30, %v537_v31  ;;  %v589_v28 = vld [vmem:[%s6090_s28 + $0x318] sm:$0xff]  ;;  %v4477_v31 = vcombine.low %v581_v20, %v585_v21 }
 0x1f0   : > { %2906 = vmatprep.subr.bf16.mxu0 %v4760_v46  ;;  %3029 = vmatprep.subr.bf16.mxu1 %v4762_v47  ;;  %v4436_v46 = vcombine.high %v540_v38, %v544_v39  ;;  %v4438_v47 = vcombine.high %v541_v40, %v545_v42  ;;  %v593_v29 = vld [vmem:[%s6090_s28 + $0x338] sm:$0xff] }
 0x1f1   : > { %v597_v38 = vld [vmem:[%s6090_s28 + $0x358] sm:$0xff]  ;;  %v4485_v42 = vcombine.low %v589_v28, %v593_v29 }
 0x1f2   : > { %v601_v39 = vld [vmem:[%s6090_s28 + $0x378] sm:$0xff] }
 0x1f3   : > { %2907 = vmatpush1.bf16.msra.mxu0 %v4759_v41  ;;  %3030 = vmatpush1.bf16.msra.mxu1 %v4761_v54  ;;  %v4444_v41 = vcombine.high %v548_v48, %v552_v49  ;;  %v4446_v54 = vcombine.high %v549_v50, %v553_v51  ;;  %v605_v48 = vld [vmem:[%s6090_s28 + $0x398] sm:$0xff]  ;;  %v4493_v51 = vcombine.low %v597_v38, %v601_v39 }
 0x1f4   : > { %3040 = vmatprep.subr.bf16.mxu0 %v4388_v55  ;;  %3163 = vmatprep.subr.bf16.mxu1 %v4390_v57  ;;  %v556_v55 = vld [vmem:[%s6090_s28 + $0x210] sm:$0xff]  ;;  %v609_v49 = vld [vmem:[%s6090_s28 + $0x3b8] sm:$0xff] }
 0x1f5   : > { %v560_v57 = vld [vmem:[%s6090_s28 + $0x230] sm:$0xff] }
 0x1f6   : > { %2909 = vmatmul.mubr.bf16.vlgmr.msra.gmra.mrb[0].mxu0 %v6348_v60  ;;  %3032 = vmatmul.mubr.bf16.vlgmr.msra.gmra.mrb[0].mxu1 %v6348_v60  ;;  %v4451_v6 = vcombine.low %v556_v55, %v560_v57 }
 0x1f7   : > { %3041 = vmatpush1.bf16.msra.mxu0 %v4387_v63  ;;  %3164 = vmatpush1.bf16.msra.mxu1 %v4389_v1  ;;  %v4452_v63 = vcombine.high %v556_v55, %v560_v57  ;;  %v4454_v1 = vcombine.high %v557_v58, %v561_v59  ;;  %v613_v55 = vld [vmem:[%s6090_s28 + $0x3d8] sm:$0xff]  ;;  %v4501_v59 = vcombine.low %v605_v48, %v609_v49 }
 0x1f8   : > { %3042 = vmatprep.subr.bf16.mxu0 %v4396_v2  ;;  %3165 = vmatprep.subr.bf16.mxu1 %v4398_v3  ;;  %v564_v2 = vld [vmem:[%s6090_s28 + $0x250] sm:$0xff]  ;;  %v617_v57 = vld [vmem:[%s6090_s28 + $0x3f8] sm:$0xff] }
 0x1f9   : > { %3072 = vmatprep.mubr.bf16.mxu0 %v6152_v0  ;;  %3195 = vmatprep.mubr.bf16.mxu1 %v6152_v0  ;;  %v4413_v0 = vcombine.low %v517_v14, %v521_v15  ;;  %v568_v3 = vld [vmem:[%s6090_s28 + $0x270] sm:$0xff]  ;;  %v4461_v15 = vcombine.low %v565_v4, %v569_v5 }
 0x1fa   : > { %v4459_v14 = vcombine.low %v564_v2, %v568_v3 }
 0x1fb   : > { %3043 = vmatpush1.bf16.msra.mxu0 %v4395_v8  ;;  %3166 = vmatpush1.bf16.msra.mxu1 %v4397_v9  ;;  %v4460_v8 = vcombine.high %v564_v2, %v568_v3  ;;  %v4462_v9 = vcombine.high %v565_v4, %v569_v5  ;;  %v621_v2 = vld [vmem:[%s6090_s28 + $0x418] sm:$0xff]  ;;  %v4509_v5 = vcombine.low %v613_v55, %v617_v57 }
 0x1fc   : > { %3044 = vmatprep.subr.bf16.mxu0 %v4404_v10  ;;  %3167 = vmatprep.subr.bf16.mxu1 %v4406_v11  ;;  %v572_v10 = vld [vmem:[%s6090_s28 + $0x290] sm:$0xff]  ;;  %v625_v3 = vld [vmem:[%s6090_s28 + $0x438] sm:$0xff] }
 0x1fd   : > { %v576_v11 = vld [vmem:[%s6090_s28 + $0x2b0] sm:$0xff] }
 0x1fe   : > { %v4467_v23 = vcombine.low %v572_v10, %v576_v11 }
 0x1ff   : > { %3045 = vmatpush1.bf16.msra.mxu0 %v4403_v16  ;;  %3168 = vmatpush1.bf16.msra.mxu1 %v4405_v17  ;;  %v4468_v16 = vcombine.high %v572_v10, %v576_v11  ;;  %v4470_v17 = vcombine.high %v573_v12, %v577_v13  ;;  %v629_v10 = vld [vmem:[%s6090_s28 + $0x458] sm:$0xff]  ;;  %v4517_v13 = vcombine.low %v621_v2, %v625_v3 }
 0x200   : > { %3046 = vmatprep.subr.bf16.mxu0 %v4412_v18  ;;  %3169 = vmatprep.subr.bf16.mxu1 %v4414_v19  ;;  %v580_v18 = vld [vmem:[%s6090_s28 + $0x2d0] sm:$0xff]  ;;  %v633_v11 = vld [vmem:[%s6090_s28 + $0x478] sm:$0xff] }
 0x201   : > { %v584_v19 = vld [vmem:[%s6090_s28 + $0x2f0] sm:$0xff] }
 0x202   : > { %v4475_v30 = vcombine.low %v580_v18, %v584_v19 }
 0x203   : > { %3047 = vmatpush1.bf16.msra.mxu0 %v4411_v25  ;;  %3170 = vmatpush1.bf16.msra.mxu1 %v4413_v0  ;;  %v4476_v25 = vcombine.high %v580_v18, %v584_v19  ;;  %v4478_v0 = vcombine.high %v581_v20, %v585_v21  ;;  %v637_v18 = vld [vmem:[%s6090_s28 + $0x498] sm:$0xff]  ;;  %v4525_v21 = vcombine.low %v629_v10, %v633_v11 }
 0x204   : > { %3048 = vmatprep.subr.bf16.mxu0 %v4420_v26  ;;  %3171 = vmatprep.subr.bf16.mxu1 %v4422_v27  ;;  %v588_v26 = vld [vmem:[%s6090_s28 + $0x310] sm:$0xff]  ;;  %v641_v19 = vld [vmem:[%s6090_s28 + $0x4b8] sm:$0xff] }
 0x205   : > { %v592_v27 = vld [vmem:[%s6090_s28 + $0x330] sm:$0xff] }
 0x206   : > { %v4483_v40 = vcombine.low %v588_v26, %v592_v27 }
 0x207   : > { %3049 = vmatpush1.bf16.msra.mxu0 %v4419_v33  ;;  %3172 = vmatpush1.bf16.msra.mxu1 %v4421_v35  ;;  %v4484_v33 = vcombine.high %v588_v26, %v592_v27  ;;  %v4486_v35 = vcombine.high %v589_v28, %v593_v29  ;;  %v645_v26 = vld [vmem:[%s6090_s28 + $0x4d8] sm:$0xff]  ;;  %v4533_v28 = vcombine.low %v637_v18, %v641_v19 }
 0x208   : > { %3050 = vmatprep.subr.bf16.mxu0 %v4428_v36  ;;  %3173 = vmatprep.subr.bf16.mxu1 %v4430_v37  ;;  %v596_v36 = vld [vmem:[%s6090_s28 + $0x350] sm:$0xff]  ;;  %v649_v27 = vld [vmem:[%s6090_s28 + $0x4f8] sm:$0xff] }
 0x209   : > { %v600_v37 = vld [vmem:[%s6090_s28 + $0x370] sm:$0xff] }
 0x20a   : > { %v4491_v50 = vcombine.low %v596_v36, %v600_v37 }
 0x20b   : > { %3051 = vmatpush1.bf16.msra.mxu0 %v4427_v43  ;;  %3174 = vmatpush1.bf16.msra.mxu1 %v4429_v45  ;;  %v4492_v43 = vcombine.high %v596_v36, %v600_v37  ;;  %v4494_v45 = vcombine.high %v597_v38, %v601_v39  ;;  %v657_v36 = vld [vmem:[%s6090_s28 + $0x538] sm:$0xff] }
 0x20c   : > { %3052 = vmatprep.subr.bf16.mxu0 %v4436_v46  ;;  %3175 = vmatprep.subr.bf16.mxu1 %v4438_v47  ;;  %v604_v46 = vld [vmem:[%s6090_s28 + $0x390] sm:$0xff] }
 0x20d   : > { %v608_v47 = vld [vmem:[%s6090_s28 + $0x3b0] sm:$0xff] }
 0x20e   : > { %v4499_v58 = vcombine.low %v604_v46, %v608_v47 }
 0x20f   : > { %3053 = vmatpush1.bf16.msra.mxu0 %v4435_v52  ;;  %3176 = vmatpush1.bf16.msra.mxu1 %v4437_v56  ;;  %v4500_v52 = vcombine.high %v604_v46, %v608_v47  ;;  %v4502_v56 = vcombine.high %v605_v48, %v609_v49 }
 0x210   : > { %3054 = vmatprep.subr.bf16.mxu0 %v4444_v41  ;;  %3177 = vmatprep.subr.bf16.mxu1 %v4446_v54  ;;  %v612_v41 = vld [vmem:[%s6090_s28 + $0x3d0] sm:$0xff] }
 0x211   : > { %v616_v54 = vld [vmem:[%s6090_s28 + $0x3f0] sm:$0xff] }
 0x212   : > { %v4507_v4 = vcombine.low %v612_v41, %v616_v54 }
 0x213   : > { %3055 = vmatpush1.bf16.msra.mxu0 %v4443_v61  ;;  %3178 = vmatpush1.bf16.msra.mxu1 %v4445_v62  ;;  %v4508_v61 = vcombine.high %v612_v41, %v616_v54  ;;  %v4510_v62 = vcombine.high %v613_v55, %v617_v57 }
 0x214   : > { %3056 = vmatprep.subr.bf16.mxu0 %v4452_v63  ;;  %3179 = vmatprep.subr.bf16.mxu1 %v4454_v1  ;;  %v620_v63 = vld [vmem:[%s6090_s28 + $0x410] sm:$0xff] }
 0x215   : > { %v624_v1 = vld [vmem:[%s6090_s28 + $0x430] sm:$0xff] }
 0x216   : > { %v4515_v12 = vcombine.low %v620_v63, %v624_v1 }
 0x217   : > { %3057 = vmatpush1.bf16.msra.mxu0 %v4451_v6  ;;  %3180 = vmatpush1.bf16.msra.mxu1 %v4453_v7  ;;  %v4516_v6 = vcombine.high %v620_v63, %v624_v1  ;;  %v4518_v7 = vcombine.high %v621_v2, %v625_v3 }
 0x218   : > { %3058 = vmatprep.subr.bf16.mxu0 %v4460_v8  ;;  %3181 = vmatprep.subr.bf16.mxu1 %v4462_v9  ;;  %v628_v8 = vld [vmem:[%s6090_s28 + $0x450] sm:$0xff] }
 0x219   : > { %v632_v9 = vld [vmem:[%s6090_s28 + $0x470] sm:$0xff] }
 0x21a   : > { %v4523_v20 = vcombine.low %v628_v8, %v632_v9 }
 0x21b   : > { %3059 = vmatpush1.bf16.msra.mxu0 %v4459_v14  ;;  %3182 = vmatpush1.bf16.msra.mxu1 %v4461_v15  ;;  %v4524_v14 = vcombine.high %v628_v8, %v632_v9  ;;  %v4526_v15 = vcombine.high %v629_v10, %v633_v11 }
 0x21c   : > { %3060 = vmatprep.subr.bf16.mxu0 %v4468_v16  ;;  %3183 = vmatprep.subr.bf16.mxu1 %v4470_v17  ;;  %v636_v16 = vld [vmem:[%s6090_s28 + $0x490] sm:$0xff] }
 0x21d   : > { %v640_v17 = vld [vmem:[%s6090_s28 + $0x4b0] sm:$0xff] }
 0x21f   : > { %3061 = vmatpush1.bf16.msra.mxu0 %v4467_v23  ;;  %3184 = vmatpush1.bf16.msra.mxu1 %v4469_v24  ;;  %v4532_v23 = vcombine.high %v636_v16, %v640_v17  ;;  %v4534_v24 = vcombine.high %v637_v18, %v641_v19 }
 0x220   : > { %3062 = vmatprep.subr.bf16.mxu0 %v4476_v25  ;;  %3185 = vmatprep.subr.bf16.mxu1 %v4478_v0  ;;  %v644_v25 = vld [vmem:[%s6090_s28 + $0x4d0] sm:$0xff] }
 0x221   : > { %v648_v0 = vld [vmem:[%s6090_s28 + $0x4f0] sm:$0xff] }
 0x222   : > { %v4540_v29 = vcombine.high %v644_v25, %v648_v0  ;;  %v4539_v37 = vcombine.low %v644_v25, %v648_v0 }
 0x223   : > { %3063 = vmatpush1.bf16.msra.mxu0 %v4475_v30  ;;  %3186 = vmatpush1.bf16.msra.mxu1 %v4477_v31  ;;  %v4542_v30 = vcombine.high %v645_v26, %v649_v27  ;;  %v652_v31 = vld [vmem:[%s6090_s28 + $0x510] sm:$0xff] }
 0x224   : > { %3064 = vmatprep.subr.bf16.mxu0 %v4484_v33  ;;  %3187 = vmatprep.subr.bf16.mxu1 %v4486_v35  ;;  %v656_v33 = vld [vmem:[%s6090_s28 + $0x530] sm:$0xff]  ;;  %v653_v35 = vld [vmem:[%s6090_s28 + $0x518] sm:$0xff] }
 0x225   : > { %v4548_v38 = vcombine.high %v652_v31, %v656_v33  ;;  %v4550_v39 = vcombine.high %v653_v35, %v657_v36  ;;  %v4547_v46 = vcombine.low %v652_v31, %v656_v33  ;;  %v4549_v47 = vcombine.low %v653_v35, %v657_v36 }
 0x227   : > { %3065 = vmatpush1.bf16.msra.mxu0 %v4483_v40  ;;  %3188 = vmatpush1.bf16.msra.mxu1 %v4485_v42  ;;  %v660_v40 = vld [vmem:[%s6090_s28 + $0x550] sm:$0xff] }
 0x228   : > { %3066 = vmatprep.subr.bf16.mxu0 %v4492_v43  ;;  %3189 = vmatprep.subr.bf16.mxu1 %v4494_v45  ;;  %v664_v42 = vld [vmem:[%s6090_s28 + $0x570] sm:$0xff]  ;;  %v661_v43 = vld [vmem:[%s6090_s28 + $0x558] sm:$0xff] }
 0x229   : > { %v665_v45 = vld [vmem:[%s6090_s28 + $0x578] sm:$0xff]  ;;  %v4556_v48 = vcombine.high %v660_v40, %v664_v42  ;;  %v4555_v41 = vcombine.low %v660_v40, %v664_v42 }
 0x22a   : > { %v4558_v49 = vcombine.high %v661_v43, %v665_v45  ;;  %v4557_v54 = vcombine.low %v661_v43, %v665_v45 }
 0x22b   : > { %3067 = vmatpush1.bf16.msra.mxu0 %v4491_v50  ;;  %3190 = vmatpush1.bf16.msra.mxu1 %v4493_v51  ;;  %v668_v50 = vld [vmem:[%s6090_s28 + $0x590] sm:$0xff] }
 0x22c   : > { %3068 = vmatprep.subr.bf16.mxu0 %v4500_v52  ;;  %3191 = vmatprep.subr.bf16.mxu1 %v4502_v56  ;;  %v672_v51 = vld [vmem:[%s6090_s28 + $0x5b0] sm:$0xff]  ;;  %v669_v52 = vld [vmem:[%s6090_s28 + $0x598] sm:$0xff] }
 0x22d   : > { %v673_v56 = vld [vmem:[%s6090_s28 + $0x5b8] sm:$0xff]  ;;  %v4564_v55 = vcombine.high %v668_v50, %v672_v51  ;;  %v4563_v63 = vcombine.low %v668_v50, %v672_v51 }
 0x22e   : > { %v4566_v57 = vcombine.high %v669_v52, %v673_v56  ;;  %v4565_v1 = vcombine.low %v669_v52, %v673_v56 }
 0x22f   : > { %3069 = vmatpush1.bf16.msra.mxu0 %v4499_v58  ;;  %3192 = vmatpush1.bf16.msra.mxu1 %v4501_v59  ;;  %v676_v58 = vld [vmem:[%s6090_s28 + $0x5d0] sm:$0xff] }
 0x230   : > { %3070 = vmatprep.subr.bf16.mxu0 %v4508_v61  ;;  %3193 = vmatprep.subr.bf16.mxu1 %v4510_v62  ;;  %v680_v59 = vld [vmem:[%s6090_s28 + $0x5f0] sm:$0xff]  ;;  %v677_v61 = vld [vmem:[%s6090_s28 + $0x5d8] sm:$0xff] }
 0x231   : > { %v681_v62 = vld [vmem:[%s6090_s28 + $0x5f8] sm:$0xff]  ;;  %v4572_v2 = vcombine.high %v676_v58, %v680_v59  ;;  %v4571_v8 = vcombine.low %v676_v58, %v680_v59 }
 0x232   : > { %v4574_v3 = vcombine.high %v677_v61, %v681_v62  ;;  %v4573_v9 = vcombine.low %v677_v61, %v681_v62 }
 0x233   : > { %3071 = vmatpush1.bf16.msra.mxu0 %v4507_v4  ;;  %3194 = vmatpush1.bf16.msra.mxu1 %v4509_v5  ;;  %v684_v4 = vld [vmem:[%s6090_s28 + $0x610] sm:$0xff] }
 0x234   : > { %3081 = vmatprep.subr.bf16.mxu0 %v4516_v6  ;;  %3204 = vmatprep.subr.bf16.mxu1 %v4518_v7  ;;  %v688_v5 = vld [vmem:[%s6090_s28 + $0x630] sm:$0xff]  ;;  %v685_v6 = vld [vmem:[%s6090_s28 + $0x618] sm:$0xff] }
 0x235   : > { %v689_v7 = vld [vmem:[%s6090_s28 + $0x638] sm:$0xff]  ;;  %v4580_v10 = vcombine.high %v684_v4, %v688_v5 }
 0x236   : > { %3073 = vmatmul.mubr.bf16.vlgmr.msra.gmra.mrb[4].mxu0 %v6198_v22  ;;  %3196 = vmatmul.mubr.bf16.vlgmr.msra.gmra.mrb[4].mxu1 %v6198_v22  ;;  %v4531_v22 = vcombine.low %v636_v16, %v640_v17  ;;  %v4582_v11 = vcombine.high %v685_v6, %v689_v7  ;;  %v4579_v16 = vcombine.low %v684_v4, %v688_v5 }
 0x237   : > { %3082 = vmatpush1.bf16.msra.mxu0 %v4515_v12  ;;  %3205 = vmatpush1.bf16.msra.mxu1 %v4517_v13  ;;  %v692_v12 = vld [vmem:[%s6090_s28 + $0x650] sm:$0xff]  ;;  %v4581_v17 = vcombine.low %v685_v6, %v689_v7 }
 0x238   : > { %3083 = vmatprep.subr.bf16.mxu0 %v4524_v14  ;;  %3206 = vmatprep.subr.bf16.mxu1 %v4526_v15  ;;  %v696_v13 = vld [vmem:[%s6090_s28 + $0x670] sm:$0xff]  ;;  %v693_v14 = vld [vmem:[%s6090_s28 + $0x658] sm:$0xff] }
 0x239   : > { %3113 = vmatprep.mubr.bf16.mxu0 %v6206_v34  ;;  %3236 = vmatprep.mubr.bf16.mxu1 %v6206_v34  ;;  %v4541_v34 = vcombine.low %v645_v26, %v649_v27  ;;  %v697_v15 = vld [vmem:[%s6090_s28 + $0x678] sm:$0xff]  ;;  %v4588_v18 = vcombine.high %v692_v12, %v696_v13  ;;  %v4587_v25 = vcombine.low %v692_v12, %v696_v13 }
 0x23a   : > { %v4590_v19 = vcombine.high %v693_v14, %v697_v15  ;;  %v4589_v0 = vcombine.low %v693_v14, %v697_v15 }
 0x23b   : > { %3084 = vmatpush1.bf16.msra.mxu0 %v4523_v20  ;;  %3207 = vmatpush1.bf16.msra.mxu1 %v4525_v21  ;;  %v700_v20 = vld [vmem:[%s6090_s28 + $0x690] sm:$0xff] }
 0x23c   : > { %3085 = vmatprep.subr.bf16.mxu0 %v4532_v23  ;;  %3208 = vmatprep.subr.bf16.mxu1 %v4534_v24  ;;  %v704_v21 = vld [vmem:[%s6090_s28 + $0x6b0] sm:$0xff]  ;;  %v701_v23 = vld [vmem:[%s6090_s28 + $0x698] sm:$0xff] }
 0x23d   : > { %v705_v24 = vld [vmem:[%s6090_s28 + $0x6b8] sm:$0xff]  ;;  %v4596_v26 = vcombine.high %v700_v20, %v704_v21  ;;  %v4595_v31 = vcombine.low %v700_v20, %v704_v21 }
 0x23e   : > { %v4598_v27 = vcombine.high %v701_v23, %v705_v24  ;;  %v4597_v33 = vcombine.low %v701_v23, %v705_v24 }
 0x23f   : > { %3086 = vmatpush1.bf16.msra.mxu0 %v4531_v22  ;;  %3209 = vmatpush1.bf16.msra.mxu1 %v4533_v28  ;;  %v708_v22 = vld [vmem:[%s6090_s28 + $0x6d0] sm:$0xff] }
 0x240   : > { %3087 = vmatprep.subr.bf16.mxu0 %v4540_v29  ;;  %3210 = vmatprep.subr.bf16.mxu1 %v4542_v30  ;;  %v712_v28 = vld [vmem:[%s6090_s28 + $0x6f0] sm:$0xff]  ;;  %v709_v29 = vld [vmem:[%s6090_s28 + $0x6d8] sm:$0xff] }
 0x241   : > { %v713_v30 = vld [vmem:[%s6090_s28 + $0x6f8] sm:$0xff]  ;;  %v4604_v35 = vcombine.high %v708_v22, %v712_v28  ;;  %v4603_v40 = vcombine.low %v708_v22, %v712_v28 }
 0x242   : > { %v4606_v36 = vcombine.high %v709_v29, %v713_v30  ;;  %v4605_v42 = vcombine.low %v709_v29, %v713_v30 }
 0x243   : > { %3088 = vmatpush1.bf16.msra.mxu0 %v4539_v37  ;;  %3211 = vmatpush1.bf16.msra.mxu1 %v4541_v34  ;;  %v716_v37 = vld [vmem:[%s6090_s28 + $0x710] sm:$0xff] }
 0x244   : > { %3089 = vmatprep.subr.bf16.mxu0 %v4548_v38  ;;  %3212 = vmatprep.subr.bf16.mxu1 %v4550_v39  ;;  %v720_v34 = vld [vmem:[%s6090_s28 + $0x730] sm:$0xff]  ;;  %v717_v38 = vld [vmem:[%s6090_s28 + $0x718] sm:$0xff] }
 0x245   : > { %v721_v39 = vld [vmem:[%s6090_s28 + $0x738] sm:$0xff]  ;;  %v4612_v43 = vcombine.high %v716_v37, %v720_v34  ;;  %v4611_v50 = vcombine.low %v716_v37, %v720_v34 }
 0x246   : > { %v4614_v45 = vcombine.high %v717_v38, %v721_v39  ;;  %v4613_v51 = vcombine.low %v717_v38, %v721_v39  ;;  %v780_v39 = vld [vmem:[%s6090_s28 + $0x910] sm:$0xff] }
 0x247   : > { %3090 = vmatpush1.bf16.msra.mxu0 %v4547_v46  ;;  %3213 = vmatpush1.bf16.msra.mxu1 %v4549_v47  ;;  %v724_v46 = vld [vmem:[%s6090_s28 + $0x750] sm:$0xff] }
 0x248   : > { %3091 = vmatprep.subr.bf16.mxu0 %v4556_v48  ;;  %3214 = vmatprep.subr.bf16.mxu1 %v4558_v49  ;;  %v728_v47 = vld [vmem:[%s6090_s28 + $0x770] sm:$0xff]  ;;  %v725_v48 = vld [vmem:[%s6090_s28 + $0x758] sm:$0xff] }
 0x249   : > { %v729_v49 = vld [vmem:[%s6090_s28 + $0x778] sm:$0xff]  ;;  %v4620_v52 = vcombine.high %v724_v46, %v728_v47  ;;  %v4619_v58 = vcombine.low %v724_v46, %v728_v47 }
 0x24a   : > { %v4622_v56 = vcombine.high %v725_v48, %v729_v49  ;;  %v4621_v59 = vcombine.low %v725_v48, %v729_v49  ;;  %v788_v48 = vld [vmem:[%s6090_s28 + $0x950] sm:$0xff] }
 0x24b   : > { %3092 = vmatpush1.bf16.msra.mxu0 %v4555_v41  ;;  %3215 = vmatpush1.bf16.msra.mxu1 %v4557_v54  ;;  %v732_v41 = vld [vmem:[%s6090_s28 + $0x790] sm:$0xff] }
 0x24c   : > { %3093 = vmatprep.subr.bf16.mxu0 %v4564_v55  ;;  %3216 = vmatprep.subr.bf16.mxu1 %v4566_v57  ;;  %v736_v54 = vld [vmem:[%s6090_s28 + $0x7b0] sm:$0xff]  ;;  %v733_v55 = vld [vmem:[%s6090_s28 + $0x798] sm:$0xff] }
 0x24d   : > { %v737_v57 = vld [vmem:[%s6090_s28 + $0x7b8] sm:$0xff]  ;;  %v4628_v61 = vcombine.high %v732_v41, %v736_v54  ;;  %v4627_v4 = vcombine.low %v732_v41, %v736_v54  ;;  %v792_v49 = vld [vmem:[%s6090_s28 + $0x970] sm:$0xff] }
 0x24e   : > { %v4630_v62 = vcombine.high %v733_v55, %v737_v57  ;;  %v4629_v5 = vcombine.low %v733_v55, %v737_v57  ;;  %v4684_v41 = vcombine.high %v788_v48, %v792_v49  ;;  %v796_v55 = vld [vmem:[%s6090_s28 + $0x990] sm:$0xff] }
 0x24f   : > { %3094 = vmatpush1.bf16.msra.mxu0 %v4563_v63  ;;  %3217 = vmatpush1.bf16.msra.mxu1 %v4565_v1  ;;  %v740_v63 = vld [vmem:[%s6090_s28 + $0x7d0] sm:$0xff] }
 0x250   : > { %3095 = vmatprep.subr.bf16.mxu0 %v4572_v2  ;;  %3218 = vmatprep.subr.bf16.mxu1 %v4574_v3  ;;  %v744_v1 = vld [vmem:[%s6090_s28 + $0x7f0] sm:$0xff]  ;;  %v741_v2 = vld [vmem:[%s6090_s28 + $0x7d8] sm:$0xff] }
 0x251   : > { %v745_v3 = vld [vmem:[%s6090_s28 + $0x7f8] sm:$0xff]  ;;  %v4636_v6 = vcombine.high %v740_v63, %v744_v1  ;;  %v4635_v12 = vcombine.low %v740_v63, %v744_v1  ;;  %v800_v57 = vld [vmem:[%s6090_s28 + $0x9b0] sm:$0xff] }
 0x252   : > { %v4638_v7 = vcombine.high %v741_v2, %v745_v3  ;;  %v4637_v13 = vcombine.low %v741_v2, %v745_v3  ;;  %v4692_v63 = vcombine.high %v796_v55, %v800_v57  ;;  %v804_v2 = vld [vmem:[%s6090_s28 + $0x9d0] sm:$0xff] }
 0x253   : > { %3096 = vmatpush1.bf16.msra.mxu0 %v4571_v8  ;;  %3219 = vmatpush1.bf16.msra.mxu1 %v4573_v9  ;;  %v748_v8 = vld [vmem:[%s6090_s28 + $0x810] sm:$0xff] }
 0x254   : > { %3097 = vmatprep.subr.bf16.mxu0 %v4580_v10  ;;  %3220 = vmatprep.subr.bf16.mxu1 %v4582_v11  ;;  %v752_v9 = vld [vmem:[%s6090_s28 + $0x830] sm:$0xff]  ;;  %v749_v10 = vld [vmem:[%s6090_s28 + $0x818] sm:$0xff] }
 0x255   : > { %v753_v11 = vld [vmem:[%s6090_s28 + $0x838] sm:$0xff]  ;;  %v4644_v14 = vcombine.high %v748_v8, %v752_v9  ;;  %v4643_v20 = vcombine.low %v748_v8, %v752_v9  ;;  %v808_v3 = vld [vmem:[%s6090_s28 + $0x9f0] sm:$0xff] }
 0x256   : > { %v4646_v15 = vcombine.high %v749_v10, %v753_v11  ;;  %v4645_v21 = vcombine.low %v749_v10, %v753_v11  ;;  %v4700_v8 = vcombine.high %v804_v2, %v808_v3  ;;  %v812_v10 = vld [vmem:[%s6090_s28 + $0xa10] sm:$0xff] }
 0x257   : > { %3098 = vmatpush1.bf16.msra.mxu0 %v4579_v16  ;;  %3221 = vmatpush1.bf16.msra.mxu1 %v4581_v17  ;;  %v756_v16 = vld [vmem:[%s6090_s28 + $0x850] sm:$0xff] }
 0x258   : > { %3099 = vmatprep.subr.bf16.mxu0 %v4588_v18  ;;  %3222 = vmatprep.subr.bf16.mxu1 %v4590_v19  ;;  %v760_v17 = vld [vmem:[%s6090_s28 + $0x870] sm:$0xff]  ;;  %v757_v18 = vld [vmem:[%s6090_s28 + $0x858] sm:$0xff] }
 0x259   : > { %v761_v19 = vld [vmem:[%s6090_s28 + $0x878] sm:$0xff]  ;;  %v4652_v23 = vcombine.high %v756_v16, %v760_v17  ;;  %v4651_v22 = vcombine.low %v756_v16, %v760_v17  ;;  %v816_v11 = vld [vmem:[%s6090_s28 + $0xa30] sm:$0xff] }
 0x25a   : > { %v4654_v24 = vcombine.high %v757_v18, %v761_v19  ;;  %v4653_v28 = vcombine.low %v757_v18, %v761_v19  ;;  %v4708_v16 = vcombine.high %v812_v10, %v816_v11  ;;  %v820_v18 = vld [vmem:[%s6090_s28 + $0xa50] sm:$0xff] }
 0x25b   : > { %3100 = vmatpush1.bf16.msra.mxu0 %v4587_v25  ;;  %3223 = vmatpush1.bf16.msra.mxu1 %v4589_v0  ;;  %v764_v25 = vld [vmem:[%s6090_s28 + $0x890] sm:$0xff] }
 0x25c   : > { %3101 = vmatprep.subr.bf16.mxu0 %v4596_v26  ;;  %3224 = vmatprep.subr.bf16.mxu1 %v4598_v27  ;;  %v768_v0 = vld [vmem:[%s6090_s28 + $0x8b0] sm:$0xff]  ;;  %v765_v26 = vld [vmem:[%s6090_s28 + $0x898] sm:$0xff] }
 0x25d   : > { %v769_v27 = vld [vmem:[%s6090_s28 + $0x8b8] sm:$0xff]  ;;  %v4660_v29 = vcombine.high %v764_v25, %v768_v0  ;;  %v824_v19 = vld [vmem:[%s6090_s28 + $0xa70] sm:$0xff] }
 0x25e   : > { %v4662_v30 = vcombine.high %v765_v26, %v769_v27  ;;  %v4661_v37 = vcombine.low %v765_v26, %v769_v27  ;;  %v828_v26 = vld [vmem:[%s6090_s28 + $0xa90] sm:$0xff] }
 0x25f   : > { %3102 = vmatpush1.bf16.msra.mxu0 %v4595_v31  ;;  %3225 = vmatpush1.bf16.msra.mxu1 %v4597_v33  ;;  %v772_v31 = vld [vmem:[%s6090_s28 + $0x8d0] sm:$0xff] }
 0x260   : > { %3103 = vmatprep.subr.bf16.mxu0 %v4604_v35  ;;  %3226 = vmatprep.subr.bf16.mxu1 %v4606_v36  ;;  %v776_v33 = vld [vmem:[%s6090_s28 + $0x8f0] sm:$0xff]  ;;  %v773_v35 = vld [vmem:[%s6090_s28 + $0x8d8] sm:$0xff] }
 0x261   : > { %v777_v36 = vld [vmem:[%s6090_s28 + $0x8f8] sm:$0xff]  ;;  %v4668_v34 = vcombine.high %v772_v31, %v776_v33  ;;  %v832_v27 = vld [vmem:[%s6090_s28 + $0xab0] sm:$0xff] }
 0x262   : > { %v4670_v38 = vcombine.high %v773_v35, %v777_v36 }
 0x263   : > { %3104 = vmatpush1.bf16.msra.mxu0 %v4603_v40  ;;  %3227 = vmatpush1.bf16.msra.mxu1 %v4605_v42  ;;  %v784_v40 = vld [vmem:[%s6090_s28 + $0x930] sm:$0xff]  ;;  %v781_v42 = vld [vmem:[%s6090_s28 + $0x918] sm:$0xff] }
 0x264   : > { %3105 = vmatprep.subr.bf16.mxu0 %v4612_v43  ;;  %3228 = vmatprep.subr.bf16.mxu1 %v4614_v45  ;;  %v785_v43 = vld [vmem:[%s6090_s28 + $0x938] sm:$0xff]  ;;  %v4667_v45 = vcombine.low %v772_v31, %v776_v33  ;;  %v4676_v46 = vcombine.high %v780_v39, %v784_v40  ;;  %v4724_v31 = vcombine.high %v828_v26, %v832_v27 }
 0x265   : > { %v4678_v47 = vcombine.high %v781_v42, %v785_v43 }
 0x267   : > { %3106 = vmatpush1.bf16.msra.mxu0 %v4611_v50  ;;  %3229 = vmatpush1.bf16.msra.mxu1 %v4613_v51  ;;  %v789_v50 = vld [vmem:[%s6090_s28 + $0x958] sm:$0xff] }
 0x268   : > { %3107 = vmatprep.subr.bf16.mxu0 %v4620_v52  ;;  %3230 = vmatprep.subr.bf16.mxu1 %v4622_v56  ;;  %v793_v51 = vld [vmem:[%s6090_s28 + $0x978] sm:$0xff]  ;;  %v4675_v52 = vcombine.low %v780_v39, %v784_v40  ;;  %v4677_v56 = vcombine.low %v781_v42, %v785_v43  ;;  %v844_v42 = vld [vmem:[%s6090_s28 + $0xb10] sm:$0xff] }
 0x269   : > { %v4686_v54 = vcombine.high %v789_v50, %v793_v51  ;;  %v848_v43 = vld [vmem:[%s6090_s28 + $0xb30] sm:$0xff] }
 0x26b   : > { %3108 = vmatpush1.bf16.msra.mxu0 %v4619_v58  ;;  %3231 = vmatpush1.bf16.msra.mxu1 %v4621_v59  ;;  %v797_v58 = vld [vmem:[%s6090_s28 + $0x998] sm:$0xff] }
 0x26c   : > { %3109 = vmatprep.subr.bf16.mxu0 %v4628_v61  ;;  %3232 = vmatprep.subr.bf16.mxu1 %v4630_v62  ;;  %v801_v59 = vld [vmem:[%s6090_s28 + $0x9b8] sm:$0xff]  ;;  %v4683_v61 = vcombine.low %v788_v48, %v792_v49  ;;  %v4685_v62 = vcombine.low %v789_v50, %v793_v51  ;;  %v4740_v48 = vcombine.high %v844_v42, %v848_v43  ;;  %v852_v50 = vld [vmem:[%s6090_s28 + $0xb50] sm:$0xff] }
 0x26d   : > { %v4694_v1 = vcombine.high %v797_v58, %v801_v59  ;;  %v856_v51 = vld [vmem:[%s6090_s28 + $0xb70] sm:$0xff] }
 0x26f   : > { %3110 = vmatpush1.bf16.msra.mxu0 %v4627_v4  ;;  %3233 = vmatpush1.bf16.msra.mxu1 %v4629_v5  ;;  %v805_v4 = vld [vmem:[%s6090_s28 + $0x9d8] sm:$0xff] }
 0x270   : > { %3111 = vmatprep.subr.bf16.mxu0 %v4636_v6  ;;  %3234 = vmatprep.subr.bf16.mxu1 %v4638_v7  ;;  %v809_v5 = vld [vmem:[%s6090_s28 + $0x9f8] sm:$0xff]  ;;  %v4691_v6 = vcombine.low %v796_v55, %v800_v57  ;;  %v4693_v7 = vcombine.low %v797_v58, %v801_v59  ;;  %v4748_v55 = vcombine.high %v852_v50, %v856_v51  ;;  %v860_v58 = vld [vmem:[%s6090_s28 + $0xb90] sm:$0xff] }
 0x271   : > { %v4702_v9 = vcombine.high %v805_v4, %v809_v5  ;;  %v864_v59 = vld [vmem:[%s6090_s28 + $0xbb0] sm:$0xff] }
 0x273   : > { %3112 = vmatpush1.bf16.msra.mxu0 %v4635_v12  ;;  %3235 = vmatpush1.bf16.msra.mxu1 %v4637_v13  ;;  %v813_v12 = vld [vmem:[%s6090_s28 + $0xa18] sm:$0xff] }
 0x274   : > { %3122 = vmatprep.subr.bf16.mxu0 %v4644_v14  ;;  %3245 = vmatprep.subr.bf16.mxu1 %v4646_v15  ;;  %v817_v13 = vld [vmem:[%s6090_s28 + $0xa38] sm:$0xff]  ;;  %v4699_v14 = vcombine.low %v804_v2, %v808_v3  ;;  %v4701_v15 = vcombine.low %v805_v4, %v809_v5  ;;  %v4756_v2 = vcombine.high %v860_v58, %v864_v59  ;;  %v868_v4 = vld [vmem:[%s6090_s28 + $0xbd0] sm:$0xff] }
 0x275   : > { %v4710_v17 = vcombine.high %v813_v12, %v817_v13  ;;  %v872_v5 = vld [vmem:[%s6090_s28 + $0xbf0] sm:$0xff] }
 0x276   : > { %3114 = vmatmul.mubr.bf16.vlgmr.msra.gmra.mrb[4].mxu0 %v6276_v44  ;;  %3237 = vmatmul.mubr.bf16.vlgmr.msra.gmra.mrb[4].mxu1 %v6276_v44  ;;  %v4659_v44 = vcombine.low %v764_v25, %v768_v0  ;;  %v4716_v25 = vcombine.high %v820_v18, %v824_v19 }
 0x277   : > { %3123 = vmatpush1.bf16.msra.mxu0 %v4643_v20  ;;  %3246 = vmatpush1.bf16.msra.mxu1 %v4645_v21  ;;  %v821_v20 = vld [vmem:[%s6090_s28 + $0xa58] sm:$0xff] }
 0x278   : > { %3124 = vmatprep.subr.bf16.mxu0 %v4652_v23  ;;  %3247 = vmatprep.subr.bf16.mxu1 %v4654_v24  ;;  %v825_v21 = vld [vmem:[%s6090_s28 + $0xa78] sm:$0xff]  ;;  %v4707_v23 = vcombine.low %v812_v10, %v816_v11  ;;  %v4709_v24 = vcombine.low %v813_v12, %v817_v13  ;;  %v4764_v10 = vcombine.high %v868_v4, %v872_v5 }
 0x279   : > { %3154 = vmatprep.mubr.bf16.mxu0 %v6282_v53  ;;  %3277 = vmatprep.mubr.bf16.mxu1 %v6282_v53  ;;  %v4669_v53 = vcombine.low %v773_v35, %v777_v36  ;;  %v4718_v0 = vcombine.high %v821_v20, %v825_v21  ;;  %v836_v35 = vld [vmem:[%s6090_s28 + $0xad0] sm:$0xff]  ;;  %v4763_v12 = vcombine.low %v868_v4, %v872_v5  ;;  %v5218_v4 = vld [vmem:[#allocation9 + $0x1c8] sm:$0xff]  }
 0x27a   : > { %v840_v36 = vld [vmem:[%s6090_s28 + $0xaf0] sm:$0xff]  ;;  %v5219_v5 = vld [vmem:[#allocation9 + $0x108] sm:$0xff]  }
 0x27b   : > { %3125 = vmatpush1.bf16.msra.mxu0 %v4651_v22  ;;  %3248 = vmatpush1.bf16.msra.mxu1 %v4653_v28  ;;  %v829_v22 = vld [vmem:[%s6090_s28 + $0xa98] sm:$0xff]  ;;  %v4732_v39 = vcombine.high %v836_v35, %v840_v36 }
 0x27c   : > { %3126 = vmatprep.subr.bf16.mxu0 %v4660_v29  ;;  %3249 = vmatprep.subr.bf16.mxu1 %v4662_v30  ;;  %v833_v28 = vld [vmem:[%s6090_s28 + $0xab8] sm:$0xff]  ;;  %v4715_v29 = vcombine.low %v820_v18, %v824_v19  ;;  %v4717_v30 = vcombine.low %v821_v20, %v825_v21  ;;  %v5185_v18 = vld [vmem:[#allocation9 + $0x48] sm:$0xff]  }
 0x27d   : > { %v4726_v33 = vcombine.high %v829_v22, %v833_v28  ;;  %v5186_v19 = vld [vmem:[#allocation9 + $0xc8] sm:$0xff]  }
 0x27e   : > { %v5187_v20 = vld [vmem:[#allocation9 + $0x8] sm:$0xff]  }
 0x27f   : > { %3127 = vmatpush1.bf16.msra.mxu0 %v4659_v44  ;;  %3250 = vmatpush1.bf16.msra.mxu1 %v4661_v37  ;;  %v837_v44 = vld [vmem:[%s6090_s28 + $0xad8] sm:$0xff]  ;;  %v5188_v21 = vld [vmem:[#allocation9 + $0x88] sm:$0xff]  }
 0x280   : > { %3128 = vmatprep.subr.bf16.mxu0 %v4668_v34  ;;  %3251 = vmatprep.subr.bf16.mxu1 %v4670_v38  ;;  %v841_v37 = vld [vmem:[%s6090_s28 + $0xaf8] sm:$0xff]  ;;  %v4723_v34 = vcombine.low %v828_v26, %v832_v27  ;;  %v4725_v38 = vcombine.low %v829_v22, %v833_v28  ;;  %v5197_v28 = vld [vmem:[#allocation9 + $0x60] sm:$0xff]  }
 0x281   : > { %v4734_v40 = vcombine.high %v837_v44, %v841_v37  ;;  %v5193_v26 = vld [vmem:[#allocation9 + $0x58] sm:$0xff]  }
 0x282   : > { %v5194_v27 = vld [vmem:[#allocation9 + $0xd8] sm:$0xff]  }
 0x283   : > { %3129 = vmatpush1.bf16.msra.mxu0 %v4667_v45  ;;  %3252 = vmatpush1.bf16.msra.mxu1 %v4669_v53  ;;  %v845_v45 = vld [vmem:[%s6090_s28 + $0xb18] sm:$0xff] }
 0x284   : > { %3130 = vmatprep.subr.bf16.mxu0 %v4676_v46  ;;  %3253 = vmatprep.subr.bf16.mxu1 %v4678_v47  ;;  %v849_v53 = vld [vmem:[%s6090_s28 + $0xb38] sm:$0xff]  ;;  %v4731_v46 = vcombine.low %v836_v35, %v840_v36  ;;  %v4733_v47 = vcombine.low %v837_v44, %v841_v37  ;;  %v5202_v35 = vld [vmem:[#allocation9 + $0xe8] sm:$0xff]   ;;  %v5205_v37 = vld [vmem:[#allocation9 + $0x70] sm:$0xff]  }
 0x285   : > { %v4742_v49 = vcombine.high %v845_v45, %v849_v53  ;;  %v5195_v22 = vld [vmem:[#allocation9 + $0x18] sm:$0xff]   ;;  %v5203_v36 = vld [vmem:[#allocation9 + $0x28] sm:$0xff]  }
 0x286   : > { %v5204_v44 = vld [vmem:[#allocation9 + $0xa8] sm:$0xff]  }
 0x287   : > { %3131 = vmatpush1.bf16.msra.mxu0 %v4675_v52  ;;  %3254 = vmatpush1.bf16.msra.mxu1 %v4677_v56  ;;  %v853_v52 = vld [vmem:[%s6090_s28 + $0xb58] sm:$0xff] }
 0x288   : > { %3132 = vmatprep.subr.bf16.mxu0 %v4684_v41  ;;  %3255 = vmatprep.subr.bf16.mxu1 %v4686_v54  ;;  %v857_v56 = vld [vmem:[%s6090_s28 + $0xb78] sm:$0xff]  ;;  %v4739_v41 = vcombine.low %v844_v42, %v848_v43  ;;  %v4741_v54 = vcombine.low %v845_v45, %v849_v53  ;;  %v5207_v45 = vld [vmem:[#allocation9 + $0x30] sm:$0xff]  }
 0x289   : > { %v4750_v57 = vcombine.high %v853_v52, %v857_v56 }
 0x28b   : > { %3133 = vmatpush1.bf16.msra.mxu0 %v4683_v61  ;;  %3256 = vmatpush1.bf16.msra.mxu1 %v4685_v62  ;;  %v861_v61 = vld [vmem:[%s6090_s28 + $0xb98] sm:$0xff] }
 0x28c   : > { %3134 = vmatprep.subr.bf16.mxu0 %v4692_v63  ;;  %3257 = vmatprep.subr.bf16.mxu1 %v4694_v1  ;;  %v865_v62 = vld [vmem:[%s6090_s28 + $0xbb8] sm:$0xff]  ;;  %v4747_v63 = vcombine.low %v852_v50, %v856_v51  ;;  %v4749_v1 = vcombine.low %v853_v52, %v857_v56  ;;  %v5213_v56 = vld [vmem:[#allocation9 + $0x140] sm:$0xff]  }
 0x28d   : > { %v4758_v3 = vcombine.high %v861_v61, %v865_v62  ;;  %v5210_v50 = vld [vmem:[#allocation9 + $0xf8] sm:$0xff]  }
 0x28e   : > { %v5211_v51 = vld [vmem:[#allocation9 + $0x38] sm:$0xff]  }
 0x28f   : > { %3135 = vmatpush1.bf16.msra.mxu0 %v4691_v6  ;;  %3258 = vmatpush1.bf16.msra.mxu1 %v4693_v7  ;;  %v869_v6 = vld [vmem:[%s6090_s28 + $0xbd8] sm:$0xff] }
 0x290   : > { %3136 = vmatprep.subr.bf16.mxu0 %v4700_v8  ;;  %3259 = vmatprep.subr.bf16.mxu1 %v4702_v9  ;;  %v873_v7 = vld [vmem:[%s6090_s28 + $0xbf8] sm:$0xff]  ;;  %v4755_v8 = vcombine.low %v860_v58, %v864_v59  ;;  %v4757_v9 = vcombine.low %v861_v61, %v865_v62  ;;  %v5215_v61 = vld [vmem:[#allocation9 + $0x100] sm:$0xff]  }
 0x291   : > { %v4766_v11 = vcombine.high %v869_v6, %v873_v7  ;;  %v4765_v13 = vcombine.low %v869_v6, %v873_v7  ;;  %v5212_v52 = vld [vmem:[#allocation9 + $0xb8] sm:$0xff]   ;;  %v5220_v6 = vld [vmem:[#allocation9 + $0x188] sm:$0xff]   ;;  %v5221_v7 = vld [vmem:[#allocation9 + $0x150] sm:$0xff]  }
 0x293   : > { %3137 = vmatpush1.bf16.msra.mxu0 %v4699_v14  ;;  %3260 = vmatpush1.bf16.msra.mxu1 %v4701_v15  ;;  %v5181_v14 = vld [vmem:[#allocation9 + $0x40] sm:$0xff]  }
 0x294   : > { %3138 = vmatprep.subr.bf16.mxu0 %v4708_v16  ;;  %3261 = vmatprep.subr.bf16.mxu1 %v4710_v17  ;;  %v5182_v15 = vld [vmem:[#allocation9 + $0xc0] sm:$0xff]  }
 0x295   : > { %v5183_v16 = vld [vmem:[#allocation9] sm:$0xff]  }
 0x296   : > { %v5184_v17 = vld [vmem:[#allocation9 + $0x80] sm:$0xff]  }
 0x297   : > { %3139 = vmatpush1.bf16.msra.mxu0 %v4707_v23  ;;  %3262 = vmatpush1.bf16.msra.mxu1 %v4709_v24  ;;  %v5189_v23 = vld [vmem:[#allocation9 + $0x50] sm:$0xff]  }
 0x298   : > { %3140 = vmatprep.subr.bf16.mxu0 %v4716_v25  ;;  %3263 = vmatprep.subr.bf16.mxu1 %v4718_v0  ;;  %v5190_v24 = vld [vmem:[#allocation9 + $0xd0] sm:$0xff]  }
 0x299   : > { %v5191_v25 = vld [vmem:[#allocation9 + $0x10] sm:$0xff]  }
 0x29a   : > { %v5192_v0 = vld [vmem:[#allocation9 + $0x90] sm:$0xff]  }
 0x29b   : > { %3141 = vmatpush1.bf16.msra.mxu0 %v4715_v29  ;;  %3264 = vmatpush1.bf16.msra.mxu1 %v4717_v30  ;;  %v5198_v29 = vld [vmem:[#allocation9 + $0xe0] sm:$0xff]  }
 0x29c   : > { %3142 = vmatprep.subr.bf16.mxu0 %v4724_v31  ;;  %3265 = vmatprep.subr.bf16.mxu1 %v4726_v33  ;;  %v5199_v30 = vld [vmem:[#allocation9 + $0x20] sm:$0xff]   ;;  %v5201_v33 = vld [vmem:[#allocation9 + $0x68] sm:$0xff]  }
 0x29d   : > { %v5200_v31 = vld [vmem:[#allocation9 + $0xa0] sm:$0xff]  }
 0x29f   : > { %3143 = vmatpush1.bf16.msra.mxu0 %v4723_v34  ;;  %3266 = vmatpush1.bf16.msra.mxu1 %v4725_v38  ;;  %v5206_v38 = vld [vmem:[#allocation9 + $0xf0] sm:$0xff]  }
 0x2a0   : > { %3144 = vmatprep.subr.bf16.mxu0 %v4732_v39  ;;  %3267 = vmatprep.subr.bf16.mxu1 %v4734_v40 }
 0x2a3   : > { %3145 = vmatpush1.bf16.msra.mxu0 %v4731_v46  ;;  %3268 = vmatpush1.bf16.msra.mxu1 %v4733_v47  ;;  %v5208_v47 = vld [vmem:[#allocation9 + $0xb0] sm:$0xff]  }
 0x2a4   : > { %3146 = vmatprep.subr.bf16.mxu0 %v4740_v48  ;;  %3269 = vmatprep.subr.bf16.mxu1 %v4742_v49  ;;  %v5209_v48 = vld [vmem:[#allocation9 + $0x78] sm:$0xff]  }
 0x2a7   : > { %3147 = vmatpush1.bf16.msra.mxu0 %v4739_v41  ;;  %3270 = vmatpush1.bf16.msra.mxu1 %v4741_v54  ;;  %v5214_v41 = vld [vmem:[#allocation9 + $0x1c0] sm:$0xff]  }
 0x2a8   : > { %3148 = vmatprep.subr.bf16.mxu0 %v4748_v55  ;;  %3271 = vmatprep.subr.bf16.mxu1 %v4750_v57 }
 0x2ab   : > { %3149 = vmatpush1.bf16.msra.mxu0 %v4747_v63  ;;  %3272 = vmatpush1.bf16.msra.mxu1 %v4749_v1  ;;  %v5216_v1 = vld [vmem:[#allocation9 + $0x180] sm:$0xff]  }
 0x2ac   : > { %3150 = vmatprep.subr.bf16.mxu0 %v4756_v2  ;;  %3273 = vmatprep.subr.bf16.mxu1 %v4758_v3  ;;  %v5217_v2 = vld [vmem:[#allocation9 + $0x148] sm:$0xff]  }
 0x2af   : > { %3151 = vmatpush1.bf16.msra.mxu0 %v4755_v8  ;;  %3274 = vmatpush1.bf16.msra.mxu1 %v4757_v9  ;;  %v5222_v8 = vld [vmem:[#allocation9 + $0x1d0] sm:$0xff]  }
 0x2b0   : > { %3152 = vmatprep.subr.bf16.mxu0 %v4764_v10  ;;  %3275 = vmatprep.subr.bf16.mxu1 %v4766_v11  ;;  %v5223_v9 = vld [vmem:[#allocation9 + $0x110] sm:$0xff]   ;;  %v5225_v11 = vld [vmem:[#allocation9 + $0x158] sm:$0xff]  }
 0x2b1   : > { %v5224_v10 = vld [vmem:[#allocation9 + $0x190] sm:$0xff]  }
 0x2b3   : > { %3153 = vmatpush1.bf16.msra.mxu0 %v4763_v12  ;;  %3276 = vmatpush1.bf16.msra.mxu1 %v4765_v13  ;;  %v5226_v12 = vld [vmem:[#allocation9 + $0x1d8] sm:$0xff]  }
 0x2b4   : > { %4850 = vmatprep.subr.bf16.mxu0 %v5181_v14  ;;  %4872 = vmatprep.subr.bf16.mxu1 %v5182_v15  ;;  %v5227_v13 = vld [vmem:[#allocation9 + $0x118] sm:$0xff]   ;;  %v5229_v15 = vld [vmem:[#allocation9 + $0x160] sm:$0xff]  }
 0x2b5   : > { %v5228_v14 = vld [vmem:[#allocation9 + $0x198] sm:$0xff]  }
 0x2b6   : > { %3155 = vmatmul.mubr.bf16.vlgmr.msra.gmra.mrb[4].mxu0 %v6348_v60  ;;  %3278 = vmatmul.mubr.bf16.vlgmr.msra.gmra.mrb[4].mxu1 %v6348_v60  ;;  %v5196_v60 = vld [vmem:[#allocation9 + $0x98] sm:$0xff]  }
 0x2b7   : > { %4851 = vmatpush3.bf16.msra.mxu0 %v5183_v16  ;;  %4873 = vmatpush3.bf16.msra.mxu1 %v5184_v17  ;;  %v5230_v16 = vld [vmem:[#allocation9 + $0x1e0] sm:$0xff]  }
 0x2b8   : > { %4852 = vmatprep.subr.bf16.mxu0 %v5185_v18  ;;  %4874 = vmatprep.subr.bf16.mxu1 %v5186_v19  ;;  %v5231_v17 = vld [vmem:[#allocation9 + $0x120] sm:$0xff]   ;;  %v5233_v19 = vld [vmem:[#allocation9 + $0x168] sm:$0xff]  }
 0x2b9   : > { %v5232_v18 = vld [vmem:[#allocation9 + $0x1a0] sm:$0xff]  }
 0x2bb   : > { %4853 = vmatpush3.bf16.msra.mxu0 %v5187_v20  ;;  %4875 = vmatpush3.bf16.msra.mxu1 %v5188_v21  ;;  %v5234_v20 = vld [vmem:[#allocation9 + $0x1e8] sm:$0xff]  }
 0x2bc   : > { %4854 = vmatprep.subr.bf16.mxu0 %v5189_v23  ;;  %4876 = vmatprep.subr.bf16.mxu1 %v5190_v24  ;;  %v5235_v21 = vld [vmem:[#allocation9 + $0x128] sm:$0xff]   ;;  %v5237_v24 = vld [vmem:[#allocation9 + $0x170] sm:$0xff]  }
 0x2bd   : > { %v5236_v23 = vld [vmem:[#allocation9 + $0x1a8] sm:$0xff]  }
 0x2bf   : > { %4855 = vmatpush3.bf16.msra.mxu0 %v5191_v25  ;;  %4877 = vmatpush3.bf16.msra.mxu1 %v5192_v0  ;;  %v5238_v25 = vld [vmem:[#allocation9 + $0x1f0] sm:$0xff]  }
 0x2c0   : > { %4856 = vmatprep.subr.bf16.mxu0 %v5193_v26  ;;  %4878 = vmatprep.subr.bf16.mxu1 %v5194_v27  ;;  %v5239_v0 = vld [vmem:[#allocation9 + $0x130] sm:$0xff]   ;;  %v5241_v27 = vld [vmem:[#allocation9 + $0x178] sm:$0xff]  }
 0x2c1   : > { %v5240_v26 = vld [vmem:[#allocation9 + $0x1b0] sm:$0xff]  }
 0x2c3   : > { %4857 = vmatpush3.bf16.msra.mxu0 %v5195_v22  ;;  %4879 = vmatpush3.bf16.msra.mxu1 %v5196_v60  ;;  %v5242_v22 = vld [vmem:[#allocation9 + $0x1f8] sm:$0xff]  }
 0x2c4   : > { %4858 = vmatprep.subr.bf16.mxu0 %v5197_v28  ;;  %4880 = vmatprep.subr.bf16.mxu1 %v5198_v29  ;;  %v5243_v60 = vld [vmem:[#allocation9 + $0x138] sm:$0xff]   ;;  %v5647_v29 = vmov 0.0  }
 0x2c5   : > { %v5244_v28 = vld [vmem:[#allocation9 + $0x1b8] sm:$0xff]  }
 0x2c7   : > { %4859 = vmatpush3.bf16.msra.mxu0 %v5199_v30  ;;  %4881 = vmatpush3.bf16.msra.mxu1 %v5200_v31 }
 0x2c8   : > { %4860 = vmatprep.subr.bf16.mxu0 %v5201_v33  ;;  %4882 = vmatprep.subr.bf16.mxu1 %v5202_v35 }
 0x2c9   : > { %v2910_v34 = vpop.f32.mrb[0].mxu0  ;;  %v3033_v39 = vpop.f32.mrb[0].mxu1 }
 0x2ca   : > { %5261 = vtanh.f32 %v2910_v34  ;;  %v2912_v40 = vpop.f32.mrb[1].mxu0  ;;  %v3035_v42 = vpop.f32.mrb[1].mxu1 }
 0x2cb   : > { %5263 = vtanh.f32 %v3033_v39  ;;  %v2914_v43 = vpop.f32.mrb[2].mxu0  ;;  %4861 = vmatpush3.bf16.msra.mxu0 %v5203_v36  ;;  %v3037_v53 = vpop.f32.mrb[2].mxu1  ;;  %4883 = vmatpush3.bf16.msra.mxu1 %v5204_v44 }
 0x2cc   : > { %5265 = vtanh.f32 %v2912_v40  ;;  %v2915_v46 = vpop.f32.mrb[3].mxu0  ;;  %4862 = vmatprep.subr.bf16.mxu0 %v5205_v37  ;;  %v3038_v49 = vpop.f32.mrb[3].mxu1  ;;  %4884 = vmatprep.subr.bf16.mxu1 %v5206_v38 }
 0x2cd   : > { %5267 = vtanh.f32 %v3035_v42  ;;  %v5247_v49 = vld [vmem:[#allocation12 + $0x10] sm:$0xff]  }
 0x2cf   : > { %4863 = vmatpush3.bf16.msra.mxu0 %v5207_v45  ;;  %4885 = vmatpush3.bf16.msra.mxu1 %v5208_v47  ;;  %v5245_v45 = vld [vmem:[#allocation12] sm:$0xff]  }
 0x2d0   : > { %4864 = vmatprep.subr.bf16.mxu0 %v5209_v48  ;;  %4886 = vmatprep.subr.bf16.mxu1 %v5210_v50  ;;  %v5246_v48 = vld [vmem:[#allocation12 + $0x8] sm:$0xff]   ;;  %v5248_v50 = vld [vmem:[#allocation12 + $0x18] sm:$0xff]  }
 0x2d3   : > { %4865 = vmatpush3.bf16.msra.mxu0 %v5211_v51  ;;  %4887 = vmatpush3.bf16.msra.mxu1 %v5212_v52  ;;  %v5249_v51 = vld [vmem:[#allocation12 + $0x20] sm:$0xff]  }
 0x2d4   : > { %v5262_v54 = vpop.eup %5261  ;;  %4894 = vmatprep.subr.bf16.mxu0 %v5213_v56  ;;  %4916 = vmatprep.subr.bf16.mxu1 %v5214_v41  ;;  %v3430_v41 = vld [vmem:[#allocation10] sm:$0x1] }
 0x2d5   : > { %v5264_v55 = vpop.eup %5263  ;;  %v3294_v62 = vpack.c.bf16 %v5262_v54, %v5262_v54 }
 0x2d6   : > { %v5266_v57 = vpop.eup %5265  ;;  %v3296_v3 = vpack.c.bf16 %v5264_v55, %v5264_v55 }
 0x2d7   : > { %v5268_v58 = vpop.eup %5267  ;;  %v3295_v59 = vpack.c.bf16 %v5266_v57, %v5266_v57 }
 0x2d8   : > { %v3297_v63 = vpack.c.bf16 %v5268_v58, %v5268_v58 }
 0x2d9   : > { %3847 = vmatprep.mubr.bf16.mxu0 %v3295_v59 }
 0x2da   : > { %3887 = vmatprep.mubr.bf16.mxu1 %v3297_v63  ;;  %3848 = vmatmul.mubr.bf16.vlgmr.msra.gmra.mrb[8].mxu0 %v3294_v62 }
 0x2db   : > { %3888 = vmatmul.mubr.bf16.vlgmr.msra.gmra.mrb[8].mxu1 %v3296_v3  ;;  %4895 = vmatpush3.bf16.msra.mxu0 %v5215_v61  ;;  %v5250_v3 = vld [vmem:[#allocation12 + $0x28] sm:$0xff]  }
 0x2dc   : > { %4917 = vmatpush3.bf16.msra.mxu1 %v5216_v1  ;;  %4896 = vmatprep.subr.bf16.mxu0 %v5217_v2 }
 0x2dd   : > { %4918 = vmatprep.subr.bf16.mxu1 %v5218_v4  ;;  %v5251_v4 = vld [vmem:[#allocation12 + $0x30] sm:$0xff]  }
 0x2df   : > { %4897 = vmatpush3.bf16.msra.mxu0 %v5219_v5  ;;  %v5252_v5 = vld [vmem:[#allocation12 + $0x38] sm:$0xff]  }
 0x2e0   : > { %4919 = vmatpush3.bf16.msra.mxu1 %v5220_v6  ;;  %4898 = vmatprep.subr.bf16.mxu0 %v5221_v7  ;;  %v5253_v6 = vld [vmem:[#allocation15] sm:$0xff]   ;;  %v5254_v7 = vld [vmem:[#allocation15 + $0x8] sm:$0xff]  }
 0x2e1   : > { %4920 = vmatprep.subr.bf16.mxu1 %v5222_v8  ;;  %v5255_v8 = vld [vmem:[#allocation15 + $0x10] sm:$0xff]  }
 0x2e3   : > { %4899 = vmatpush3.bf16.msra.mxu0 %v5223_v9  ;;  %v5256_v9 = vld [vmem:[#allocation15 + $0x18] sm:$0xff]  }
 0x2e4   : > { %4921 = vmatpush3.bf16.msra.mxu1 %v5224_v10  ;;  %4900 = vmatprep.subr.bf16.mxu0 %v5225_v11  ;;  %v5257_v10 = vld [vmem:[#allocation15 + $0x20] sm:$0xff]   ;;  %v5258_v11 = vld [vmem:[#allocation15 + $0x28] sm:$0xff]  }
 0x2e5   : > { %4922 = vmatprep.subr.bf16.mxu1 %v5226_v12 }
 0x2e7   : > { %4901 = vmatpush3.bf16.msra.mxu0 %v5227_v13 }
 0x2e8   : > { %4923 = vmatpush3.bf16.msra.mxu1 %v5228_v14  ;;  %4902 = vmatprep.subr.bf16.mxu0 %v5229_v15 }
 0x2e9   : > { %4924 = vmatprep.subr.bf16.mxu1 %v5230_v16 }
 0x2eb   : > { %4903 = vmatpush3.bf16.msra.mxu0 %v5231_v17 }
 0x2ec   : > { %4925 = vmatpush3.bf16.msra.mxu1 %v5232_v18  ;;  %4904 = vmatprep.subr.bf16.mxu0 %v5233_v19 }
 0x2ed   : > { %4926 = vmatprep.subr.bf16.mxu1 %v5234_v20 }
 0x2ef   : > { %4905 = vmatpush3.bf16.msra.mxu0 %v5235_v21 }
 0x2f0   : > { %4927 = vmatpush3.bf16.msra.mxu1 %v5236_v23  ;;  %4906 = vmatprep.subr.bf16.mxu0 %v5237_v24 }
 0x2f1   : > { %4928 = vmatprep.subr.bf16.mxu1 %v5238_v25 }
 0x2f3   : > { %4907 = vmatpush3.bf16.msra.mxu0 %v5239_v0 }
 0x2f4   : > { %4929 = vmatpush3.bf16.msra.mxu1 %v5240_v26  ;;  %4908 = vmatprep.subr.bf16.mxu0 %v5241_v27  ;;  %v5259_v26 = vld [vmem:[#allocation15 + $0x30] sm:$0xff]   ;;  %v5260_v27 = vld [vmem:[#allocation15 + $0x38] sm:$0xff]  }
 0x2f5   : > { %4930 = vmatprep.subr.bf16.mxu1 %v5242_v22  ;;  %v3993_v22 = vld [vmem:[#allocation13] sm:$0x1] }
 0x2f7   : > { %4909 = vmatpush3.bf16.msra.mxu0 %v5243_v60 }
 0x2f8   : > { %4931 = vmatpush3.bf16.msra.mxu1 %v5244_v28  ;;  %4956 = vmatprep.subr.bf16.mxu0 %v5647_v29 }
 0x2f9   : > { %4976 = vmatprep.subr.bf16.mxu1 %v5647_v29 }
 0x389   : > { %v3156_v30 = vpop.f32.mrb[4].mxu0  ;;  %v3279_v31 = vpop.f32.mrb[4].mxu1 }
 0x38a   : > { %5269 = vtanh.f32 %v3156_v30  ;;  %v3158_v33 = vpop.f32.mrb[5].mxu0  ;;  %v3281_v35 = vpop.f32.mrb[5].mxu1 }
 0x38b   : > { %5271 = vtanh.f32 %v3279_v31  ;;  %v3160_v36 = vpop.f32.mrb[6].mxu0  ;;  %v3283_v44 = vpop.f32.mrb[6].mxu1 }
 0x38c   : > { %5273 = vtanh.f32 %v3158_v33  ;;  %v3161_v37 = vpop.f32.mrb[7].mxu0  ;;  %v3284_v34 = vpop.f32.mrb[7].mxu1  ;;  %v4190_v44 = vand.u32 127, %v454_v32 }
 0x38d   : > { %5275 = vtanh.f32 %v3281_v35  ;;  %v4100_v37 = vld [vmem:[#allocation16] sm:$0x1] }
 0x38e   : > { %vm4191_vm1 = vcmp.lt.s32.totalorder %v4190_v44, 11 }
 0x394   : > { %v5270_v38 = vpop.eup %5269 }
 0x395   : > { %v5272_v39 = vpop.eup %5271  ;;  %v3298_v53 = vpack.c.bf16 %v5270_v38, %v5270_v38 }
 0x396   : > { %v5274_v40 = vpop.eup %5273  ;;  %v3300_v47 = vpack.c.bf16 %v5272_v39, %v5272_v39 }
 0x397   : > { %v5276_v42 = vpop.eup %5275  ;;  %v3299_v43 = vpack.c.bf16 %v5274_v40, %v5274_v40 }
 0x398   : > { %v3301_v46 = vpack.c.bf16 %v5276_v42, %v5276_v42 }
 0x399   : > { %3927 = vmatprep.mubr.bf16.mxu0 %v3299_v43 }
 0x39a   : > { %3967 = vmatprep.mubr.bf16.mxu1 %v3301_v46  ;;  %3928 = vmatmul.mubr.bf16.vlgmr.msra.gmra.mrb[12].mxu0 %v3298_v53 }
 0x39b   : > { %3968 = vmatmul.mubr.bf16.vlgmr.msra.gmra.mrb[12].mxu1 %v3300_v47  ;;  %4957 = vmatpush3.bf16.msra.mxu0 %v5245_v45 }
 0x39c   : > { %4958 = vmatprep.subr.bf16.mxu0 %v5647_v29  ;;  %4972 = vmatprep.mubr.msk.bf16.mxu0 %vm5648_vm0, %v5647_v29 }
 0x39d   : > { %4992 = vmatprep.mubr.msk.bf16.mxu1 %vm5648_vm0, %v5647_v29  ;;  %4977 = vmatpush3.bf16.msra.mxu1 %v5253_v6 }
 0x39e   : > { %4978 = vmatprep.subr.bf16.mxu1 %v5647_v29 }
 0x39f   : > { %4959 = vmatpush3.bf16.msra.mxu0 %v5246_v48 }
 0x3a0   : > { %4960 = vmatprep.subr.bf16.mxu0 %v5647_v29 }
 0x3a1   : > { %4979 = vmatpush3.bf16.msra.mxu1 %v5254_v7 }
 0x3a2   : > { %4980 = vmatprep.subr.bf16.mxu1 %v5647_v29 }
 0x3a3   : > { %4961 = vmatpush3.bf16.msra.mxu0 %v5247_v49 }
 0x3a4   : > { %4962 = vmatprep.subr.bf16.mxu0 %v5647_v29 }
 0x3a5   : > { %4981 = vmatpush3.bf16.msra.mxu1 %v5255_v8 }
 0x3a6   : > { %4982 = vmatprep.subr.bf16.mxu1 %v5647_v29 }
 0x3a7   : > { %4963 = vmatpush3.bf16.msra.mxu0 %v5248_v50 }
 0x3a8   : > { %4964 = vmatprep.subr.bf16.mxu0 %v5647_v29 }
 0x3a9   : > { %4983 = vmatpush3.bf16.msra.mxu1 %v5256_v9 }
 0x3aa   : > { %4984 = vmatprep.subr.bf16.mxu1 %v5647_v29 }
 0x3ab   : > { %4965 = vmatpush3.bf16.msra.mxu0 %v5249_v51 }
 0x3ac   : > { %4966 = vmatprep.subr.bf16.mxu0 %v5647_v29 }
 0x3ad   : > { %v4866_v52 = vpop.f32.mrb[8].mxu0  ;;  %4985 = vmatpush3.bf16.msra.mxu1 %v5257_v10 }
 0x3ae   : > { %v4888_v56 = vpop.f32.mrb[8].mxu1  ;;  %v4867_v54 = vpop.f32.mrb[9].mxu0  ;;  %4986 = vmatprep.subr.bf16.mxu1 %v5647_v29 }
 0x3af   : > { %v4868_v55 = vadd.f32 %v4867_v54, %v4866_v52  ;;  %v4889_v57 = vpop.f32.mrb[9].mxu1  ;;  %v4869_v58 = vpop.f32.mrb[10].mxu0  ;;  %4967 = vmatpush3.bf16.msra.mxu0 %v5250_v3 }
 0x3b0   : > { %v4890_v59 = vadd.f32 %v4889_v57, %v4888_v56  ;;  %v4891_v61 = vpop.f32.mrb[10].mxu1  ;;  %v4870_v62 = vpop.f32.mrb[11].mxu0  ;;  %4968 = vmatprep.subr.bf16.mxu0 %v5647_v29 }
 0x3b1   : > { %v3850_v63 = vadd.f32 %v4868_v55, %v3430_v41  ;;  %v4892_v1 = vpop.f32.mrb[11].mxu1  ;;  %4987 = vmatpush3.bf16.msra.mxu1 %v5258_v11 }
 0x3b2   : > { %4988 = vmatprep.subr.bf16.mxu1 %v5647_v29 }
 0x3b3   : > { %v3890_v2 = vadd.f32 %v4890_v59, %v3850_v63  ;;  %4969 = vmatpush3.bf16.msra.mxu0 %v5251_v4 }
 0x3b4   : > { %4970 = vmatprep.subr.bf16.mxu0 %v5647_v29 }
 0x3b5   : > { %4989 = vmatpush3.bf16.msra.mxu1 %v5259_v26 }
 0x3b6   : > { %4990 = vmatprep.subr.bf16.mxu1 %v5647_v29 }
 0x3b7   : > { %4971 = vmatpush3.bf16.msra.mxu0 %v5252_v5 }
 0x3b9   : > { %4991 = vmatpush3.bf16.msra.mxu1 %v5260_v27 }
 0x46d   : > { %v4910_v12 = vpop.f32.mrb[12].mxu0 }
 0x46e   : > { %v4932_v13 = vpop.f32.mrb[12].mxu1  ;;  %v4911_v14 = vpop.f32.mrb[13].mxu0 }
 0x46f   : > { %v4912_v15 = vadd.f32 %v4911_v14, %v4910_v12  ;;  %v4933_v16 = vpop.f32.mrb[13].mxu1  ;;  %v4913_v17 = vpop.f32.mrb[14].mxu0 }
 0x470   : > { %v4934_v18 = vadd.f32 %v4933_v16, %v4932_v13  ;;  %v4935_v19 = vpop.f32.mrb[14].mxu1  ;;  %v4914_v20 = vpop.f32.mrb[15].mxu0 }
 0x471   : > { %v3930_v21 = vadd.f32 %v4912_v15, %v3890_v2  ;;  %v4936_v23 = vpop.f32.mrb[15].mxu1 }
 0x473   : > { %v3970_v24 = vadd.f32 %v4934_v18, %v3930_v21 }
 0x475   : > { %v3975_v25 = vmax.f32 %v3970_v24, 0.0 }
 0x477   : > { %v3976_v0 = vpack.c.bf16 %v3975_v25, %v3975_v25 }
 0x479   : > { %4973 = vmatmul.mubr.bf16.vlgmr.msra.gmra.mrb[16].mxu0 %v3976_v0 }
 0x54c   : > { %v4076_v60 = vpop.f32.mrb[16].mxu0 }
 0x54d   : > { %v4077_v28 = vadd.f32 %v4076_v60, %v3993_v22  ;;  %v4974_v30 = vpop.f32.mrb[17].mxu0 }
 0x54e   : > { %v4079_v31 = vpop.f32.mrb[18].mxu0 }
 0x54f   : > { %v4082_v33 = vmax.f32 %v4077_v28, 0.0  ;;  %v4975_v35 = vpop.f32.mrb[19].mxu0 }
 0x551   : > { %v4083_v36 = vpack.c.bf16 %v4082_v33, %v4082_v33 }
 0x553   : > { %4993 = vmatmul.mubr.bf16.vlgmr.msra.gmra.mrb[16].mxu1 %v4083_v36 }
 0x626   : > { %v4183_v34 = vpop.f32.mrb[16].mxu1 }
 0x627   : > { %v4184_v38 = vadd.f32 %v4183_v34, %v4100_v37  ;;  %v4994_v39 = vpop.f32.mrb[17].mxu1 }
 0x628   : > { %v4186_v29 = vpop.f32.mrb[18].mxu1 }
 0x629   : > { %v4995_v40 = vpop.f32.mrb[19].mxu1  ;;  %v4192_v42 = vsel %vm4191_vm1, %v4184_v38, -1e+30 }
 0x62a   : > { %v4194_v43 = vsel %vm4193_vm2, %v4192_v42, -inf }
 0x62b   : > { %4195 = vmax.xlane.f32.xlu0 %v4194_v43 }
 0x6b8   : > { %v4196_v45 = vpop.xlane.xlu0 %4195 }
 0x6b9   : > { %v4197_v53 = vsub.f32 %v4192_v42, %v4196_v45 }
 0x6bb   : > { %v4198_v46 = vmul.f32 1.442695, %v4197_v53 }
 0x6bd   : > { %5277 = vpow2.f32 %v4198_v46 }
 0x6c7   : > { %v5278_v47 = vpop.eup %5277 }
 0x6c8   : > { %v4200_v32 = vsel %vm4193_vm2, %v5278_v47, 0.0 }
 0x6c9   : > { %4201 = vadd.xlane.f32.xlu0 %v4200_v32 }
 0x756   : > { %v4202_v48 = vpop.xlane.xlu0 %4201 }
 0x757   : > { %5279 = vrcp.f32 %v4202_v48 }
 0x761   : > { %v5280_v49 = vpop.eup %5279 }
 0x762   : > { %v4204_v50 = vmul.f32 %v5280_v49, %v5278_v47 }
 0x764   : > { %4205 = vst [vmem:[%s449_s12] sm:$0x1] %v4204_v50 }
 0x765   : > { %5533 = shalt.err (!%p5530_p13)
}
 0x766   : > { %s5534_s6 = scalar_lea.hbm %s6574_s5, 16  ;;  %s5538_s2 = scalar_lea.hbm %s6691_s10, 32 }
 0x767   : > { %p5535_p0 = scmp.ne.s32.totalorder %s6574_s5, %s5534_s6  ;;  %p5539_p5 = scmp.lt.u32.totalorder %s6574_s5, %s6691_s10 }
 0x768   : > { %p5540_p1 = scmp.lt.u32.totalorder %s5538_s2, %s5534_s6  ;;  %p5542_p9 = scmp.lt.u32.totalorder %s5534_s6, %s6574_s5 }
 0x769   : > { %p5536_p6 = pnand %p5535_p0, %p6692_p8 }
 0x76a   : > { %p5541_p7 = por %p5540_p1, %p5539_p5 }
 0x76b   : > { %p5537_p11 = pneg %p5536_p6 }
 0x76c   : > { %p5543_p4 = por %p5542_p9, %p5541_p7 }
 0x76e   : > { %p5544_p10 = pnand %p5543_p4, %p5537_p11 }
 0x770   : > { %5547 = shalt.err (!%p5544_p10)
}
 0x771   : > { %5064 = dma.vmem_to_hbm [thread:$0]  (%p6692_p8), %s6576_s16, 16, %s6574_s5, %s4207_s19  }
 0x772 PF: > { %s4231_s12 = sand.u32 1, %s5620_s22   ;;  %p6693_p12 = scmp.ne.s32.totalorder %s6671_s25, 0 }
 0x773   : > { %p6694_p3 = scmp.ge.s32.totalorder %s5632_s24, 2  ;;  %s4232_s15 = scalar_lea.sflag [#allocation6], %s4231_s12 }
 0x775   : > { %p5095_p2 = pnand %p6694_p3, %p6693_p12 }
 0x777   : > { %5603 = dma.done.wait (!%p5095_p2), %s4232_s15, 16  }
 0x778   : > { %5605 = vsyncadd (!%p5095_p2), %s4232_s15, 4294967280  ;;  %p32_p8 = scmp.ge.s32.totalorder %s5914_s18, 4   ;;  %s6695_s19 = smov %s5612_s20 }
 0x779   : > { %s6696_s20 = smov %s5616_s21  ;;  %s6697_s21 = smov %s5986_s13 }
 0x77a   : > { %s6698_s22 = smov %s5624_s0  ;;  %s6699_s0 = smov %s5628_s23 }
 0x77b   : > { %s6700_s23 = smov %s5925_s17  ;;  %s6701_s24 = smov %s5914_s18 }
 0x77c   :  { %34 = sbr.rel (!%p32_p8) target bundleno = 26 (0x1a), region = 134 }
 0x783   :  { %4236 = vsyncpa [#allocation5], 1 }
 0x784   :  { %4238 = vsyncpa [#allocation5 + $0x1], 1 }
 0x785   :  { %4239 = vsyncpa [#allocation8], 1 }
 0x786   :  { %4241 = vsyncpa [#allocation8 + $0x1], 1 }
 0x787   :  { %4242 = vsyncpa [#allocation11], 1 }
 0x788   :  { %4243 = vsyncpa [#allocation14], 1 }
 0x789   :  { %4244 = vsyncpa [#allocation17], 1 }
 0x78a   :  { %4245 = vsyncpa [#allocation6], 1 }
 0x78b   :  { %4247 = vsyncpa [#allocation6 + $0x1], 1 }

</bundles_post_ra>
